<compile_context>
chip_gen: v7x
topology: tpu7x:2x2x1
jax: 0.10.0
libtpu: 0.0.40
codegen_flags: <defaults>
</compile_context>

<pallas_src>
import functools

import jax
import jax.numpy as jnp
from jax.experimental import pallas as pl
from jax.experimental.pallas import tpu as pltpu


OUT_PAD = 128  # lane-dense padded logits width (sliced to num_classes on host)


def _hybrid_kernel(x_ref, ws_ref, bs_ref,
                   w1_ref, b1_ref,
                   w2_ref, b2_ref,
                   w3_ref, b3_ref,
                   w4_ref, b4_ref,
                   out_ref, acc_ref, *, inv_hw):
    r = pl.program_id(1)

    @pl.when(r == 0)
    def _():
        acc_ref[...] = jnp.zeros_like(acc_ref)

    # ---- backbone stand-in: pointwise conv Cin->Cf + SiLU ------------------
    # Channels-first tile (Cin, hw_tile): spatial on the 128-lane axis.
    # Cin is tiny (3), so the conv is Cin broadcast FMAs on the VPU instead of
    # an MXU matmul whose K dim would be >97% zero padding.
    x = x_ref[...].astype(jnp.float32)            # (Cin, hw_tile), f32 math (v5e-safe)
    ws = ws_ref[...]                              # (Cf, Cin)
    h = ws[:, 0:1] * x[0:1, :]                    # (Cf, hw_tile)
    for c in range(1, x.shape[0]):                # static, tiny loop over input channels
        h = h + ws[:, c:c + 1] * x[c:c + 1, :]
    h = h + bs_ref[...]                           # (Cf, 1) broadcast over lanes
    h = h * jax.nn.sigmoid(h)                     # SiLU (EUP)

    # ---- AdaptiveAvgPool2d(1): accumulate spatial sum in f32 scratch -------
    acc_ref[...] += h.sum(axis=1, keepdims=True)  # (Cf, 1), XLU lane reduction

    # ---- head: one-time epilogue on the last spatial tile of this image ----
    @pl.when(r == pl.num_programs(1) - 1)
    def _():
        pooled = acc_ref[...] * inv_hw            # (Cf, 1) == AdaptiveAvgPool2d(1)

        # feature_processor Linear(Cf,512)+BN(folded)+ReLU.
        # Broadcast-multiply + sublane reduce turns the pooled column into a
        # row-oriented vector without any in-kernel transpose.
        f = jnp.sum(pooled * w1_ref[...], axis=0, keepdims=True) + b1_ref[...]
        f = jnp.maximum(f, 0.0)                   # (1, 512)

        # classifier (BN folded into the Linears)
        g = jnp.dot(f, w2_ref[...], preferred_element_type=jnp.float32) + b2_ref[...]
        g = jnp.maximum(g, 0.0)                   # (1, 256)
        k = jnp.dot(g, w3_ref[...], preferred_element_type=jnp.float32) + b3_ref[...]
        k = jnp.maximum(k, 0.0)                   # (1, 128)

        out_ref[...] = (jnp.dot(k, w4_ref[...], preferred_element_type=jnp.float32)
                        + b4_ref[...])            # (1, OUT_PAD) lane-dense store


def _fold_bn(w, b, gamma, beta, mean, var, eps=1e-5):
    """Fold an eval-mode BatchNorm1d into the preceding Linear.

    w: (in, out)  b: (1, out)  BN params: (out,)
    """
    scale = gamma / jnp.sqrt(var + eps)
    w_f = w * scale[None, :]
    b_f = (b - mean[None, :]) * scale[None, :] + beta[None, :]
    return w_f, b_f


def _const_spec(shape):
    nd = len(shape)
    return pl.BlockSpec(shape, lambda b, r, _nd=nd: (0,) * _nd)


@functools.partial(jax.jit, static_argnames=("num_classes", "hw_tile"))
def hybrid_road_distress_forward(x_nchw, params, num_classes=3, hw_tile=128):
    """x_nchw: (B, Cin, H, W) float32 -> logits (B, num_classes)."""
    B, Cin, H, W = x_nchw.shape
    HW = H * W
    assert hw_tile % 128 == 0 and HW % hw_tile == 0, "spatial tile must be a 128-multiple dividing H*W"
    R = HW // hw_tile

    # NCHW -> (B, Cin, H*W): pure reshape (no transpose); spatial stays the fast
    # axis so it lands on the 128-lane dimension in the kernel.
    # Stream activations in bf16; the kernel upcasts to f32 before elementwise.
    # TODO(synk): a production pipeline should hand over bf16 activations
    # directly so this cast does not cost an extra HBM pass.
    x_flat = x_nchw.reshape(B, Cin, HW).astype(jnp.bfloat16)

    # Fold the three eval-mode BatchNorm1d layers into their Linear layers.
    w1, b1 = _fold_bn(params["w1"], params["b1"], *params["bn1"])
    w2, b2 = _fold_bn(params["w2"], params["b2"], *params["bn2"])
    w3, b3 = _fold_bn(params["w3"], params["b3"], *params["bn3"])

    # Pad the final Linear to a lane-dense 128-wide output (sliced below).
    w4 = jnp.zeros((128, OUT_PAD), jnp.float32).at[:, :num_classes].set(params["w4"])
    b4 = jnp.zeros((1, OUT_PAD), jnp.float32).at[:, :num_classes].set(params["b4"])

    ws, bs = params["ws"], params["bs"]
    Cf = ws.shape[0]

    grid_spec = pltpu.PrefetchScalarGridSpec(
        num_scalar_prefetch=0,
        grid=(B, R),
        in_specs=[
            # activation stream: one (Cin, hw_tile) block per (batch, tile)
            pl.BlockSpec((None, Cin, hw_tile), lambda b, r: (b, 0, r)),
            # weights / biases: constant-index full blocks (fetched once, resident)
            _const_spec((Cf, Cin)),
            _const_spec((Cf, 1)),
            _const_spec((Cf, 512)),
            _const_spec((1, 512)),
            _const_spec((512, 256)),
            _const_spec((1, 256)),
            _const_spec((256, 128)),
            _const_spec((1, 128)),
            _const_spec((128, OUT_PAD)),
            _const_spec((1, OUT_PAD)),
        ],
        out_specs=pl.BlockSpec((None, 1, OUT_PAD), lambda b, r: (b, 0, 0)),
        scratch_shapes=[pltpu.VMEM((Cf, 1), jnp.float32)],   # pooled-sum accumulator
    )

    flops = (2 * B * HW * Cin * Cf
             + 2 * B * (Cf * 512 + 512 * 256 + 256 * 128 + 128 * OUT_PAD))
    transcendentals = B * HW * Cf  # sigmoid in SiLU
    bytes_accessed = (x_flat.size * x_flat.dtype.itemsize
                      + 4 * (ws.size + bs.size + w1.size + b1.size + w2.size
                             + b2.size + w3.size + b3.size + w4.size + b4.size)
                      + B * OUT_PAD * 4)

    out = pl.pallas_call(
        functools.partial(_hybrid_kernel, inv_hw=1.0 / HW),
        out_shape=jax.ShapeDtypeStruct((B, 1, OUT_PAD), jnp.float32),
        grid_spec=grid_spec,
        compiler_params=pltpu.CompilerParams(
            dimension_semantics=("parallel", "arbitrary"),
            vmem_limit_bytes=32 * 1024 * 1024),
        cost_estimate=pl.CostEstimate(flops=flops,
                                      transcendentals=transcendentals,
                                      bytes_accessed=bytes_accessed),
    )(x_flat, ws, bs, w1, b1, w2, b2, w3, b3, w4, b4)

    return out.reshape(B, OUT_PAD)[:, :num_classes]


def _reference_forward(x_nchw, params, num_classes=3):
    """Pure-JAX reference (same bf16 activation stream, f32 math)."""
    B, Cin, H, W = x_nchw.shape
    x = x_nchw.reshape(B, Cin, H * W).astype(jnp.bfloat16).astype(jnp.float32)
    h = jnp.einsum("fc,bcs->bfs", params["ws"], x,
                   precision=jax.lax.Precision.HIGHEST) + params["bs"][None]
    h = h * jax.nn.sigmoid(h)
    pooled = h.mean(axis=2)                                    # (B, Cf)
    w1, b1 = _fold_bn(params["w1"], params["b1"], *params["bn1"])
    w2, b2 = _fold_bn(params["w2"], params["b2"], *params["bn2"])
    w3, b3 = _fold_bn(params["w3"], params["b3"], *params["bn3"])
    hp = jax.lax.Precision.HIGHEST
    f = jnp.maximum(jnp.dot(pooled, w1, precision=hp) + b1, 0.0)
    g = jnp.maximum(jnp.dot(f, w2, precision=hp) + b2, 0.0)
    k = jnp.maximum(jnp.dot(g, w3, precision=hp) + b3, 0.0)
    return jnp.dot(k, params["w4"], precision=hp) + params["b4"]


def make_params(key, cin=3, cf=64, num_classes=3):
    """Deterministic synthetic parameters (shapes follow the PyTorch module).

    Stem weight is stored (Cf, Cin) for the channels-first VPU stem; the head
    Linears are stored transposed as (in, out) for the kernel's `x @ W` form.
    """
    ks = jax.random.split(key, 8)

    def normal(k, shape, std):
        return std * jax.random.normal(k, shape, jnp.float32)

    def kaiming_fan_out(k, in_dim, out_dim):
        # kaiming_normal_(mode='fan_out', nonlinearity='relu') -> std = sqrt(2/out)
        return normal(k, (in_dim, out_dim), (2.0 / out_dim) ** 0.5)

    def bn(dim):
        # fresh BatchNorm1d running stats: gamma=1, beta=0, mean=0, var=1
        return (jnp.ones((dim,), jnp.float32), jnp.zeros((dim,), jnp.float32),
                jnp.zeros((dim,), jnp.float32), jnp.ones((dim,), jnp.float32))

    return {
        # backbone stem stand-in (1x1 conv Cin -> Cf), stored (Cf, Cin)
        "ws": normal(ks[0], (cf, cin), (2.0 / cin) ** 0.5),
        "bs": jnp.zeros((cf, 1), jnp.float32),
        # feature_processor Linear(Cf, 512) + BN(512)
        "w1": normal(ks[1], (cf, 512), (1.0 / cf) ** 0.5),
        "b1": jnp.zeros((1, 512), jnp.float32),
        "bn1": bn(512),
        # classifier Linear(512, 256) + BN(256)   (kaiming fan_out init)
        "w2": kaiming_fan_out(ks[2], 512, 256),
        "b2": jnp.zeros((1, 256), jnp.float32),
        "bn2": bn(256),
        # classifier Linear(256, 128) + BN(128)
        "w3": kaiming_fan_out(ks[3], 256, 128),
        "b3": jnp.zeros((1, 128), jnp.float32),
        "bn3": bn(128),
        # classifier Linear(128, num_classes)
        "w4": kaiming_fan_out(ks[4], 128, num_classes),
        "b4": jnp.zeros((1, num_classes), jnp.float32),
    }


if __name__ == "__main__":
    key = jax.random.PRNGKey(0)
    k_x, k_p = jax.random.split(key)

    B, Cin, H, W = 2, 3, 16, 16          # small RGB-like input
    Cf = 64                               # stand-in for EfficientNet-B3's 1536
    num_classes = 3

    x = jax.random.normal(k_x, (B, Cin, H, W), jnp.float32)
    params = make_params(k_p, cin=Cin, cf=Cf, num_classes=num_classes)

    # hw_tile=128 -> 2 spatial tiles per image: exercises the accumulate/epilogue path.
    logits = hybrid_road_distress_forward(x, params, num_classes=num_classes,
                                          hw_tile=128)
    jax.block_until_ready(logits)
    assert logits.shape == (B, num_classes) and logits.dtype == jnp.float32

    ref = _reference_forward(x, params, num_classes=num_classes)
    assert bool(jnp.all(jnp.isfinite(logits)))
    assert bool(jnp.allclose(logits, ref, rtol=1e-2, atol=1e-3)), (logits, ref)

    print("KERNEL_OK")
</pallas_src>

<mosaic_0001>
module attributes {stable_mosaic.version = 11 : i64} {
  func.func @_hybrid_kernel(%arg0: i32, %arg1: i32, %arg2: memref<1x3x128xbf16, #tpu.memory_space<vmem>>, %arg3: memref<64x3xf32, #tpu.memory_space<vmem>>, %arg4: memref<64x1xf32, #tpu.memory_space<vmem>>, %arg5: memref<64x512xf32, #tpu.memory_space<vmem>>, %arg6: memref<1x512xf32, #tpu.memory_space<vmem>>, %arg7: memref<512x256xf32, #tpu.memory_space<vmem>>, %arg8: memref<1x256xf32, #tpu.memory_space<vmem>>, %arg9: memref<256x128xf32, #tpu.memory_space<vmem>>, %arg10: memref<1x128xf32, #tpu.memory_space<vmem>>, %arg11: memref<128x128xf32, #tpu.memory_space<vmem>>, %arg12: memref<1x128xf32, #tpu.memory_space<vmem>>, %arg13: memref<1x1x128xf32, #tpu.memory_space<vmem>>, %arg14: memref<64x1xf32, #tpu.memory_space<vmem>>) attributes {dimension_semantics = [#tpu.dimension_semantics<parallel>, #tpu.dimension_semantics<arbitrary>], iteration_bounds = array<i64: 2, 2>, scalar_prefetch = 0 : i64, scratch_operands = 1 : i64, tpu.core_type = #tpu.core_type<tc>, window_params = [{transform_indices = @transform_0, window_bounds = array<i64: 1, 3, 128>}, {pipeline_mode = #tpu.pipeline_mode<synchronous>, transform_indices = @transform_1, window_bounds = array<i64: 64, 3>}, {pipeline_mode = #tpu.pipeline_mode<synchronous>, transform_indices = @transform_2, window_bounds = array<i64: 64, 1>}, {pipeline_mode = #tpu.pipeline_mode<synchronous>, transform_indices = @transform_3, window_bounds = array<i64: 64, 512>}, {pipeline_mode = #tpu.pipeline_mode<synchronous>, transform_indices = @transform_4, window_bounds = array<i64: 1, 512>}, {pipeline_mode = #tpu.pipeline_mode<synchronous>, transform_indices = @transform_5, window_bounds = array<i64: 512, 256>}, {pipeline_mode = #tpu.pipeline_mode<synchronous>, transform_indices = @transform_6, window_bounds = array<i64: 1, 256>}, {pipeline_mode = #tpu.pipeline_mode<synchronous>, transform_indices = @transform_7, window_bounds = array<i64: 256, 128>}, {pipeline_mode = #tpu.pipeline_mode<synchronous>, transform_indices = @transform_8, window_bounds = array<i64: 1, 128>}, {pipeline_mode = #tpu.pipeline_mode<synchronous>, transform_indices = @transform_9, window_bounds = array<i64: 128, 128>}, {pipeline_mode = #tpu.pipeline_mode<synchronous>, transform_indices = @transform_10, window_bounds = array<i64: 1, 128>}, {transform_indices = @transform_11, window_bounds = array<i64: 1, 1, 128>}]} {
    %c0_i32 = arith.constant 0 : i32
    %0 = arith.cmpi eq, %arg1, %c0_i32 : i32
    %1 = arith.extui %0 : i1 to i32
    %c0_i32_0 = arith.constant 0 : i32
    %2 = arith.cmpi ne, %1, %c0_i32_0 : i32
    scf.if %2 {
      %cst_13 = arith.constant 0.000000e+00 : f32
      %41 = vector.broadcast %cst_13 : f32 to vector<64x1xf32>
      %c0_14 = arith.constant 0 : index
      %c0_15 = arith.constant 0 : index
      %42 = vector.load %arg14[%c0_14, %c0_15] : memref<64x1xf32, #tpu.memory_space<vmem>>, vector<64x1xf32>
      tpu.vector_store %arg14[%c0_14, %c0_15], %41 {strides = array<i32>} : memref<64x1xf32, #tpu.memory_space<vmem>>, vector<64x1xf32>,
    } else {
    }
    %c0 = arith.constant 0 : index
    %c0_1 = arith.constant 0 : index
    %c0_2 = arith.constant 0 : index
    %3 = vector.load %arg2[%c0, %c0_1, %c0_2] : memref<1x3x128xbf16, #tpu.memory_space<vmem>>, vector<1x3x128xbf16>
    %4 = vector.shape_cast %3 : vector<1x3x128xbf16> to vector<3x128xbf16>
    %5 = arith.extf %4 : vector<3x128xbf16> to vector<3x128xf32>
    %c0_3 = arith.constant 0 : index
    %c0_4 = arith.constant 0 : index
    %6 = vector.load %arg3[%c0_3, %c0_4] : memref<64x3xf32, #tpu.memory_space<vmem>>, vector<64x3xf32>
    %7 = vector.extract_strided_slice %6 {offsets = [0, 0], sizes = [64, 1], strides = [1, 1]} : vector<64x3xf32> to vector<64x1xf32>
    %8 = vector.extract_strided_slice %5 {offsets = [0, 0], sizes = [1, 128], strides = [1, 1]} : vector<3x128xf32> to vector<1x128xf32>
    %9 = vector.broadcast %7 : vector<64x1xf32> to vector<64x128xf32>
    %10 = vector.broadcast %8 : vector<1x128xf32> to vector<64x128xf32>
    %11 = arith.mulf %9, %10 : vector<64x128xf32>
    %12 = vector.extract_strided_slice %6 {offsets = [0, 1], sizes = [64, 1], strides = [1, 1]} : vector<64x3xf32> to vector<64x1xf32>
    %13 = vector.extract_strided_slice %5 {offsets = [1, 0], sizes = [1, 128], strides = [1, 1]} : vector<3x128xf32> to vector<1x128xf32>
    %14 = vector.broadcast %12 : vector<64x1xf32> to vector<64x128xf32>
    %15 = vector.broadcast %13 : vector<1x128xf32> to vector<64x128xf32>
    %16 = arith.mulf %14, %15 : vector<64x128xf32>
    %17 = arith.addf %11, %16 : vector<64x128xf32>
    %18 = vector.extract_strided_slice %6 {offsets = [0, 2], sizes = [64, 1], strides = [1, 1]} : vector<64x3xf32> to vector<64x1xf32>
    %19 = vector.extract_strided_slice %5 {offsets = [2, 0], sizes = [1, 128], strides = [1, 1]} : vector<3x128xf32> to vector<1x128xf32>
    %20 = vector.broadcast %18 : vector<64x1xf32> to vector<64x128xf32>
    %21 = vector.broadcast %19 : vector<1x128xf32> to vector<64x128xf32>
    %22 = arith.mulf %20, %21 : vector<64x128xf32>
    %23 = arith.addf %17, %22 : vector<64x128xf32>
    %c0_5 = arith.constant 0 : index
    %c0_6 = arith.constant 0 : index
    %24 = vector.load %arg4[%c0_5, %c0_6] : memref<64x1xf32, #tpu.memory_space<vmem>>, vector<64x1xf32>
    %25 = vector.broadcast %24 : vector<64x1xf32> to vector<64x128xf32>
    %26 = arith.addf %23, %25 : vector<64x128xf32>
    %27 = arith.negf %26 : vector<64x128xf32>
    %28 = math.exp %27 : vector<64x128xf32>
    %cst = arith.constant 1.000000e+00 : f32
    %29 = vector.broadcast %cst : f32 to vector<64x128xf32>
    %30 = arith.addf %29, %28 : vector<64x128xf32>
    %31 = arith.divf %29, %30 : vector<64x128xf32>
    %32 = arith.mulf %26, %31 : vector<64x128xf32>
    %c0_7 = arith.constant 0 : index
    %c0_8 = arith.constant 0 : index
    %33 = vector.load %arg14[%c0_7, %c0_8] : memref<64x1xf32, #tpu.memory_space<vmem>>, vector<64x1xf32>
    %cst_9 = arith.constant dense<0.000000e+00> : vector<64xf32>
    %34 = vector.multi_reduction <add>, %32, %cst_9 [1] : vector<64x128xf32> to vector<64xf32>
    %35 = vector.shape_cast %34 : vector<64xf32> to vector<64x1xf32>
    %36 = arith.addf %33, %35 : vector<64x1xf32>
    %c0_10 = arith.constant 0 : index
    %c0_11 = arith.constant 0 : index
    %37 = vector.load %arg14[%c0_10, %c0_11] : memref<64x1xf32, #tpu.memory_space<vmem>>, vector<64x1xf32>
    tpu.vector_store %arg14[%c0_10, %c0_11], %36 {strides = array<i32>} : memref<64x1xf32, #tpu.memory_space<vmem>>, vector<64x1xf32>,
    %c1_i32 = arith.constant 1 : i32
    %38 = arith.cmpi eq, %arg1, %c1_i32 : i32
    %39 = arith.extui %38 : i1 to i32
    %c0_i32_12 = arith.constant 0 : i32
    %40 = arith.cmpi ne, %39, %c0_i32_12 : i32
    scf.if %40 {
      %c0_13 = arith.constant 0 : index
      %c0_14 = arith.constant 0 : index
      %41 = vector.load %arg14[%c0_13, %c0_14] : memref<64x1xf32, #tpu.memory_space<vmem>>, vector<64x1xf32>
      %cst_15 = arith.constant 3.906250e-03 : f32
      %42 = vector.broadcast %cst_15 : f32 to vector<64x1xf32>
      %43 = arith.mulf %41, %42 : vector<64x1xf32>
      %c0_16 = arith.constant 0 : index
      %c0_17 = arith.constant 0 : index
      %44 = vector.load %arg5[%c0_16, %c0_17] : memref<64x512xf32, #tpu.memory_space<vmem>>, vector<64x512xf32>
      %45 = vector.broadcast %43 : vector<64x1xf32> to vector<64x512xf32>
      %46 = arith.mulf %45, %44 : vector<64x512xf32>
      %cst_18 = arith.constant dense<0.000000e+00> : vector<512xf32>
      %47 = vector.multi_reduction <add>, %46, %cst_18 [0] : vector<64x512xf32> to vector<512xf32>
      %48 = vector.shape_cast %47 : vector<512xf32> to vector<1x512xf32>
      %c0_19 = arith.constant 0 : index
      %c0_20 = arith.constant 0 : index
      %49 = vector.load %arg6[%c0_19, %c0_20] : memref<1x512xf32, #tpu.memory_space<vmem>>, vector<1x512xf32>
      %50 = arith.addf %48, %49 : vector<1x512xf32>
      %cst_21 = arith.constant 0.000000e+00 : f32
      %51 = vector.broadcast %cst_21 : f32 to vector<1x512xf32>
      %52 = arith.maximumf %50, %51 : vector<1x512xf32>
      %c0_22 = arith.constant 0 : index
      %c0_23 = arith.constant 0 : index
      %53 = vector.load %arg7[%c0_22, %c0_23] : memref<512x256xf32, #tpu.memory_space<vmem>>, vector<512x256xf32>
      %cst_24 = arith.constant dense<0.000000e+00> : vector<1x256xf32>
      %54 = tpu.matmul %52, %53, %cst_24 {dimension_numbers = #tpu.dot_dimension_numbers<[1], [0], [0], [1], [0, 0, 1, 1], [], []>} : vector<1x512xf32>, vector<512x256xf32>, vector<1x256xf32> -> vector<1x256xf32>
      %c0_25 = arith.constant 0 : index
      %c0_26 = arith.constant 0 : index
      %55 = vector.load %arg8[%c0_25, %c0_26] : memref<1x256xf32, #tpu.memory_space<vmem>>, vector<1x256xf32>
      %56 = arith.addf %54, %55 : vector<1x256xf32>
      %cst_27 = arith.constant 0.000000e+00 : f32
      %57 = vector.broadcast %cst_27 : f32 to vector<1x256xf32>
      %58 = arith.maximumf %56, %57 : vector<1x256xf32>
      %c0_28 = arith.constant 0 : index
      %c0_29 = arith.constant 0 : index
      %59 = vector.load %arg9[%c0_28, %c0_29] : memref<256x128xf32, #tpu.memory_space<vmem>>, vector<256x128xf32>
      %cst_30 = arith.constant dense<0.000000e+00> : vector<1x128xf32>
      %60 = tpu.matmul %58, %59, %cst_30 {dimension_numbers = #tpu.dot_dimension_numbers<[1], [0], [0], [1], [0, 0, 1, 1], [], []>} : vector<1x256xf32>, vector<256x128xf32>, vector<1x128xf32> -> vector<1x128xf32>
      %c0_31 = arith.constant 0 : index
      %c0_32 = arith.constant 0 : index
      %61 = vector.load %arg10[%c0_31, %c0_32] : memref<1x128xf32, #tpu.memory_space<vmem>>, vector<1x128xf32>
      %62 = arith.addf %60, %61 : vector<1x128xf32>
      %cst_33 = arith.constant 0.000000e+00 : f32
      %63 = vector.broadcast %cst_33 : f32 to vector<1x128xf32>
      %64 = arith.maximumf %62, %63 : vector<1x128xf32>
      %c0_34 = arith.constant 0 : index
      %c0_35 = arith.constant 0 : index
      %65 = vector.load %arg11[%c0_34, %c0_35] : memref<128x128xf32, #tpu.memory_space<vmem>>, vector<128x128xf32>
      %cst_36 = arith.constant dense<0.000000e+00> : vector<1x128xf32>
      %66 = tpu.matmul %64, %65, %cst_36 {dimension_numbers = #tpu.dot_dimension_numbers<[1], [0], [0], [1], [0, 0, 1, 1], [], []>} : vector<1x128xf32>, vector<128x128xf32>, vector<1x128xf32> -> vector<1x128xf32>
      %c0_37 = arith.constant 0 : index
      %c0_38 = arith.constant 0 : index
      %67 = vector.load %arg12[%c0_37, %c0_38] : memref<1x128xf32, #tpu.memory_space<vmem>>, vector<1x128xf32>
      %68 = arith.addf %66, %67 : vector<1x128xf32>
      %c0_39 = arith.constant 0 : index
      %c0_40 = arith.constant 0 : index
      %c0_41 = arith.constant 0 : index
      %69 = vector.load %arg13[%c0_39, %c0_40, %c0_41] : memref<1x1x128xf32, #tpu.memory_space<vmem>>, vector<1x1x128xf32>
      %70 = vector.shape_cast %69 : vector<1x1x128xf32> to vector<1x128xf32>
      %71 = vector.shape_cast %68 : vector<1x128xf32> to vector<1x1x128xf32>
      tpu.vector_store %arg13[%c0_39, %c0_40, %c0_41], %71 {strides = array<i32>} : memref<1x1x128xf32, #tpu.memory_space<vmem>>, vector<1x1x128xf32>,
    } else {
    }
    return
  }
  func.func @transform_0(%arg0: i32, %arg1: i32) -> (i32, i32, i32) {
    %c0_i32 = arith.constant 0 : i32
    %c0_i32_0 = arith.constant 0 : i32
    return %arg0, %c0_i32, %arg1 : i32, i32, i32
  }
  func.func @transform_1(%arg0: i32, %arg1: i32) -> (i32, i32) {
    %c0_i32 = arith.constant 0 : i32
    %c0_i32_0 = arith.constant 0 : i32
    %c0_i32_1 = arith.constant 0 : i32
    return %c0_i32, %c0_i32_0 : i32, i32
  }
  func.func @transform_2(%arg0: i32, %arg1: i32) -> (i32, i32) {
    %c0_i32 = arith.constant 0 : i32
    %c0_i32_0 = arith.constant 0 : i32
    %c0_i32_1 = arith.constant 0 : i32
    return %c0_i32, %c0_i32_0 : i32, i32
  }
  func.func @transform_3(%arg0: i32, %arg1: i32) -> (i32, i32) {
    %c0_i32 = arith.constant 0 : i32
    %c0_i32_0 = arith.constant 0 : i32
    %c0_i32_1 = arith.constant 0 : i32
    return %c0_i32, %c0_i32_0 : i32, i32
  }
  func.func @transform_4(%arg0: i32, %arg1: i32) -> (i32, i32) {
    %c0_i32 = arith.constant 0 : i32
    %c0_i32_0 = arith.constant 0 : i32
    %c0_i32_1 = arith.constant 0 : i32
    return %c0_i32, %c0_i32_0 : i32, i32
  }
  func.func @transform_5(%arg0: i32, %arg1: i32) -> (i32, i32) {
    %c0_i32 = arith.constant 0 : i32
    %c0_i32_0 = arith.constant 0 : i32
    %c0_i32_1 = arith.constant 0 : i32
    return %c0_i32, %c0_i32_0 : i32, i32
  }
  func.func @transform_6(%arg0: i32, %arg1: i32) -> (i32, i32) {
    %c0_i32 = arith.constant 0 : i32
    %c0_i32_0 = arith.constant 0 : i32
    %c0_i32_1 = arith.constant 0 : i32
    return %c0_i32, %c0_i32_0 : i32, i32
  }
  func.func @transform_7(%arg0: i32, %arg1: i32) -> (i32, i32) {
    %c0_i32 = arith.constant 0 : i32
    %c0_i32_0 = arith.constant 0 : i32
    %c0_i32_1 = arith.constant 0 : i32
    return %c0_i32, %c0_i32_0 : i32, i32
  }
  func.func @transform_8(%arg0: i32, %arg1: i32) -> (i32, i32) {
    %c0_i32 = arith.constant 0 : i32
    %c0_i32_0 = arith.constant 0 : i32
    %c0_i32_1 = arith.constant 0 : i32
    return %c0_i32, %c0_i32_0 : i32, i32
  }
  func.func @transform_9(%arg0: i32, %arg1: i32) -> (i32, i32) {
    %c0_i32 = arith.constant 0 : i32
    %c0_i32_0 = arith.constant 0 : i32
    %c0_i32_1 = arith.constant 0 : i32
    return %c0_i32, %c0_i32_0 : i32, i32
  }
  func.func @transform_10(%arg0: i32, %arg1: i32) -> (i32, i32) {
    %c0_i32 = arith.constant 0 : i32
    %c0_i32_0 = arith.constant 0 : i32
    %c0_i32_1 = arith.constant 0 : i32
    return %c0_i32, %c0_i32_0 : i32, i32
  }
  func.func @transform_11(%arg0: i32, %arg1: i32) -> (i32, i32, i32) {
    %c0_i32 = arith.constant 0 : i32
    %c0_i32_0 = arith.constant 0 : i32
    %c0_i32_1 = arith.constant 0 : i32
    return %arg0, %c0_i32, %c0_i32_0 : i32, i32, i32
  }
}

</mosaic_0001>

<bundles_post_ra>
// kernel: hybrid_road_distress_forward.1
= control target key start
LH: loop header
LB: loop body
LE: loop exit
PB: predicated region body
PF: predicated region fallthrough
CT: control target
= control target key end

     0   :  { %s2976_s0 = inlined_call_operand.vmem [shape: bf16[2,3,256], index: 0, kind: input, shape index: {}]   ;;  %s2977_s1 = inlined_call_operand.vmem [shape: f32[64,3], index: 1, kind: input, shape index: {}]   ;;  %s2978_s2 = inlined_call_operand.vmem [shape: f32[64,1], index: 2, kind: input, shape index: {}]   ;;  %s2979_s3 = inlined_call_operand.vmem [shape: f32[64,512], index: 3, kind: input, shape index: {}]   ;;  %s2980_s4 = inlined_call_operand.vmem [shape: f32[1,512], index: 4, kind: input, shape index: {}]   ;;  %s2981_s5 = inlined_call_operand.vmem [shape: f32[512,256], index: 5, kind: input, shape index: {}]   ;;  %s2982_s6 = inlined_call_operand.vmem [shape: f32[1,256], index: 6, kind: input, shape index: {}]   ;;  %s2983_s7 = inlined_call_operand.vmem [shape: f32[256,128], index: 7, kind: input, shape index: {}]   ;;  %s2984_s8 = inlined_call_operand.vmem [shape: f32[1,128], index: 8, kind: input, shape index: {}]   ;;  %s2985_s9 = inlined_call_operand.vmem [shape: f32[128,128], index: 9, kind: input, shape index: {}]   ;;  %s2986_s10 = inlined_call_operand.vmem [shape: f32[1,128], index: 10, kind: input, shape index: {}]   ;;  %s2987_s11 = inlined_call_operand.hbm [shape: f32[2,1,128], index: 11, kind: output, shape index: {}]  }
   0x1   :  { %2992 = sst [smem:[#allocation10_spill]] %s2976_s0 }
   0x2   :  { %2993 = sst [smem:[#allocation11_spill]] %s2977_s1 }
   0x3   :  { %16 = vsyncpa [#allocation4], 0 }
   0x4   :  { %18 = vsyncpa [#allocation4 + $0x1], 0  ;;  %s2086_s17 = smov 0   ;;  %s2088_s18 = smov 0  }
   0x5   :  { %s2090_s19 = smov 0   ;;  %s2092_s20 = smov 0  }
   0x6   :  { %s2094_s21 = smov 0   ;;  %s2096_s22 = smov 0  }
   0x7   :  { %s2098_s23 = smov 0   ;;  %s2100_s24 = smov 0  }
   0x8 LB: > { %2994 = sst [smem:[#allocation6_spill]] %s2007_s22  ;;  %s1506_s25 = sadd.s32 4294967295, %s2015_s24   ;;  %s2015_s24 = sphi %s2100_s24, %s24_s24   ;;  %s2011_s23 = sphi %s2098_s23, %s3006_s23   ;;  %s2007_s22 = sphi %s2096_s22, %s3005_s22   ;;  %s2003_s21 = sphi %s2094_s21, %s3004_s21   ;;  %s1999_s20 = sphi %s2092_s20, %s3003_s20   ;;  %s1995_s19 = sphi %s2090_s19, %s3009_s19   ;;  %s1991_s18 = sphi %s2088_s18, %s3008_s18   ;;  %s1987_s17 = sphi %s2086_s17, %s3007_s17  }
   0x9   : > { %2995 = sst [smem:[#allocation7_spill]] %s2011_s23  ;;  %s1507_s26 = sadd.s32 4294967294, %s2015_s24  }
   0xa   : > { %s33_s27 = sadd.s32 1, %s2007_s22  ;;  %s36_s28 = sadd.s32 1, %s2011_s23 }
   0xb   : > { %p34_p0 = scmp.ge.s32.totalorder %s33_s27, 2  ;;  %p291_p1 = scmp.ne.s32.totalorder %s1995_s19, %s1991_s18 }
   0xc   : > { %p292_p2 = scmp.eq.s32.totalorder %s1506_s25, 3  ;;  %p297_p4 = scmp.ne.s32.totalorder %s1991_s18, %s1987_s17 }
   0xd   : > { %s3011_s27 = smov (%p34_p0, %s33_s27), 0  ;;  %s3013_s28 = smov (!%p34_p0, %s36_s28), %s2011_s23 }
   0xe   : > { %2996 = sst [smem:[#allocation8_spill]] %s3011_s27  ;;  %p2135_p3 = por %p292_p2, %p291_p1 }
   0xf   : > { %p38_p5 = scmp.ge.s32.totalorder %s3013_s28, 2  ;;  %p298_p6 = scmp.eq.s32.totalorder %s1507_s26, 3 }
  0x10   : > { %p1510_p7 = scmp.ge.s32.totalorder %s2015_s24, 1  ;;  %p357_p8 = scmp.lt.s32.totalorder %s2015_s24, 5 }
  0x11   : > { %s3015_s28 = smov (%p38_p5, %s3013_s28), 0  ;;  %p2145_p9 = por %p298_p6, %p297_p4 }
  0x12   : > { %2998 = sst [smem:[#allocation9_spill]] %s3015_s28  ;;  %p358_p10 = pnand %p1510_p7, %p357_p8 }
  0x13   : > { %s278_s12 = ssub.s32 %s2011_s23, %s3015_s28  ;;  %s281_s13 = sadd.s32 1, %s1995_s19 }
  0x14   : > { %p279_p11 = scmp.eq.s32.totalorder %s278_s12, 0  ;;  %361 = sbr.rel (%p358_p10) target bundleno = 1318 (0x526), region = 64 }
  0x15   : > { %s2991_s15 = sand.u32 (!%p358_p10), 1, %s1991_s18   ;;  %p399_p12 = scmp.lt.s32.totalorder (!%p358_p10), %s2003_s21, 1 }
  0x16   : > { %s2153_s14 = scalar_select %p279_p11, %s1995_s19, %s281_s13  }
  0x17   : > { %p401_p13 = scmp.lt.s32.totalorder (!%p358_p10), %s1999_s20, 1  ;;  %s3000_s0 = sld [smem:[#allocation10_spill]] (!%p358_p10) }
  0x18   : > { %s2167_s13 = scalar_lea.vmem (!%p358_p10), [#allocation3], %s2991_s15  ;;  %p1513_p0 = scmp.ne.s32.totalorder (!%p358_p10), %s1999_s20, 0 }
  0x1b   : > { %s400_s16 = scalar_select %p399_p12, %s2003_s21, 1 }
  0x1c   : > { %s402_s25 = scalar_select %p401_p13, %s1999_s20, 1 }
  0x1d   : > { %s1511_s26 = sshll.u32 %s400_s16, 1  ;;  %410 = sbr.rel (%p1513_p0) target bundleno = 36 (0x24), region = 68  ;;  %vm411_vm0 = vcmask (!%p1513_p0), 7168   ;;  %v2017_v0 = vmov (!%p1513_p0), 0.0  }
  0x1e   : > { %s404_s27 = sadd.s32 %s1511_s26, %s402_s25  ;;  %412 = vst.msk [vmem:[#allocation2] sm:$0xff] (!%p1513_p0), %vm411_vm0, %v2017_v0  ;;  %413 = vst.msk [vmem:[#allocation2 + $0x8] sm:$0xff] (!%p1513_p0), %vm411_vm0, %v2017_v0 }
  0x1f   : > { %s1512_s22 = sshll.u32 %s404_s27, 1  ;;  %414 = vst.msk [vmem:[#allocation2 + $0x10] sm:$0xff] (!%p1513_p0), %vm411_vm0, %v2017_v0  ;;  %415 = vst.msk [vmem:[#allocation2 + $0x18] sm:$0xff] (!%p1513_p0), %vm411_vm0, %v2017_v0 }
  0x20   : > { %s2163_s12 = scalar_lea.vmem %s3000_s0, %s1512_s22  ;;  %416 = vst.msk [vmem:[#allocation2 + $0x20] sm:$0xff] (!%p1513_p0), %vm411_vm0, %v2017_v0  ;;  %417 = vst.msk [vmem:[#allocation2 + $0x28] sm:$0xff] (!%p1513_p0), %vm411_vm0, %v2017_v0 }
  0x21   : > { %418 = vst.msk [vmem:[#allocation2 + $0x30] sm:$0xff] (!%p1513_p0), %vm411_vm0, %v2017_v0  ;;  %419 = vst.msk [vmem:[#allocation2 + $0x38] sm:$0xff] (!%p1513_p0), %vm411_vm0, %v2017_v0 }
  0x24 PF: > { %s3001_s1 = sld [smem:[#allocation11_spill]]  ;;  %v2018_v3 = vmov 1   ;;  %v2019_v4 = vmov 0   ;;  %v2020_v9 = vmov 2   ;;  %v586_v12 = vld [vmem:[%s2978_s2] sm:$0xff]  ;;  %v589_v13 = vld [vmem:[%s2978_s2 + $0x18] sm:$0xff]  ;;  %v470_v32 = vlaneseq }
  0x25   : > { %1881 = vset.pattern.permute.xlu0 %v2018_v3  ;;  %1880 = vset.pattern.permute.xlu1 %v2019_v4  ;;  %v591_v14 = vld [vmem:[%s2978_s2 + $0x28] sm:$0xff]  ;;  %v593_v16 = vld [vmem:[%s2978_s2 + $0x38] sm:$0xff]  ;;  %v588_v17 = vld [vmem:[%s2978_s2 + $0x10] sm:$0xff]  ;;  %vm730_vm1 = vcmask 7168   ;;  %p1522_p1 = scmp.ne.s32.totalorder %s1999_s20, 1 }
  0x26   : > { %v587_v15 = vld [vmem:[%s2978_s2 + $0x8] sm:$0xff]  ;;  %v590_v18 = vld [vmem:[%s2978_s2 + $0x20] sm:$0xff]  ;;  %v592_v19 = vld [vmem:[%s2978_s2 + $0x30] sm:$0xff]  ;;  %v2224_v35 = vshrl.u32 %v470_v32, 7  ;;  %vm2023_vm2 = vmmov (!%p1522_p1), 0  }
  0x27   : > { %v420_v37 = vld [vmem:[%s2163_s12] sm:$0x3] }
  0x28   : > { %v2230_v39 = vsub.s32 0, %v2224_v35  ;;  %v421_v40 = vunpack.c.l.bf16 %v420_v37  ;;  %v2233_v43 = vsub.s32 1, %v2224_v35  ;;  %v568_v44 = vsub.s32 2, %v2224_v35 }
  0x2a   : > { %v424_v1 = vld [vmem:[%s3001_s1 + $0x10] sm:$0xff]  ;;  %v422_v2 = vld [vmem:[%s3001_s1] sm:$0xff]  ;;  %v425_v5 = vld [vmem:[%s3001_s1 + $0x18] sm:$0xff]  ;;  %v473_v45 = vrot.slane %v421_v40, %v2230_v39  ;;  %v517_v48 = vrot.slane %v421_v40, %v2233_v43  ;;  %v2240_v49 = vrot.slane %v421_v40, %v568_v44 }
  0x2b   : > { %442 = vperm.xlu1 %1880, %v424_v1   ;;  %483 = vperm.xlu0 %1881, %v422_v2   ;;  %v427_v6 = vld [vmem:[%s3001_s1 + $0x28] sm:$0xff]  ;;  %v429_v7 = vld [vmem:[%s3001_s1 + $0x38] sm:$0xff]  ;;  %v426_v10 = vld [vmem:[%s3001_s1 + $0x20] sm:$0xff] }
  0x2c   : > { %v423_v8 = vld [vmem:[%s3001_s1 + $0x8] sm:$0xff]  ;;  %v428_v11 = vld [vmem:[%s3001_s1 + $0x30] sm:$0xff] }
  0x2f   : > { %447 = vperm.xlu1 %1880, %v425_v5   ;;  %495 = vperm.xlu0 %1881, %v425_v5  }
  0x33   : > { %457 = vperm.xlu1 %1880, %v427_v6   ;;  %503 = vperm.xlu0 %1881, %v427_v6  }
  0x37   : > { %467 = vperm.xlu1 %1880, %v429_v7   ;;  %511 = vperm.xlu0 %1881, %v429_v7  }
  0x3b   : > { %1882 = vset.pattern.permute.xlu1 %v2018_v3  ;;  %1884 = vset.pattern.permute.xlu0 %v2020_v9 }
  0x3c   : > { %487 = vperm.xlu1 %1882, %v423_v8   ;;  %539 = vperm.xlu0 %1884, %v423_v8  }
  0x40   : > { %491 = vperm.xlu1 %1882, %v424_v1   ;;  %551 = vperm.xlu0 %1884, %v426_v10  }
  0x44   : > { %499 = vperm.xlu1 %1882, %v426_v10   ;;  %559 = vperm.xlu0 %1884, %v428_v11  }
  0x48   : > { %507 = vperm.xlu1 %1882, %v428_v11   ;;  %1885 = vset.pattern.permute.xlu0 %v2019_v4 }
  0x49   : > { %432 = vperm.xlu0 %1885, %v422_v2  }
  0x4c   : > { %1883 = vset.pattern.permute.xlu1 %v2020_v9 }
  0x4d   : > { %535 = vperm.xlu1 %1883, %v422_v2   ;;  %437 = vperm.xlu0 %1885, %v423_v8  }
  0x51   : > { %543 = vperm.xlu1 %1883, %v424_v1   ;;  %452 = vperm.xlu0 %1885, %v426_v10  }
  0x55   : > { %547 = vperm.xlu1 %1883, %v425_v5   ;;  %462 = vperm.xlu0 %1885, %v428_v11  }
  0x59   : > { %555 = vperm.xlu1 %1883, %v427_v6   ;;  %596 = vperm.xlu0 %1885, %v586_v12  }
  0x5d   : > { %563 = vperm.xlu1 %1883, %v429_v7   ;;  %611 = vperm.xlu0 %1885, %v589_v13  }
  0x61   : > { %1886 = vset.pattern.permute.xlu1 %v2019_v4  ;;  %621 = vperm.xlu0 %1885, %v591_v14  }
  0x62   : > { %601 = vperm.xlu1 %1886, %v587_v15  }
  0x65   : > { %631 = vperm.xlu0 %1885, %v593_v16  }
  0x66   : > { %606 = vperm.xlu1 %1886, %v588_v17  }
  0x6a   : > { %616 = vperm.xlu1 %1886, %v590_v18  }
  0x6e   : > { %626 = vperm.xlu1 %1886, %v592_v19  }
  0xaa   : > { %v2218_v20 = vpop.permute.xlu1 %442  ;;  %v484_v21 = vpop.permute.xlu0 %483 }
  0xab   : > { %v518_v51 = vmul.f32 %v517_v48, %v484_v21  ;;  %v476_v19 = vmul.f32 %v473_v45, %v2218_v20 }
  0xae   : > { %v448_v22 = vpop.permute.xlu1 %447  ;;  %v496_v23 = vpop.permute.xlu0 %495 }
  0xaf   : > { %v477_v55 = vmul.f32 %v473_v45, %v448_v22  ;;  %v521_v56 = vmul.f32 %v517_v48, %v496_v23 }
  0xb1   : > { %v529_v1 = vadd.f32 %v521_v56, %v477_v55 }
  0xb2   : > { %v458_v24 = vpop.permute.xlu1 %457  ;;  %v504_v25 = vpop.permute.xlu0 %503 }
  0xb3   : > { %v479_v60 = vmul.f32 %v473_v45, %v458_v24  ;;  %v523_v61 = vmul.f32 %v517_v48, %v504_v25 }
  0xb5   : > { %v531_v7 = vadd.f32 %v523_v61, %v479_v60 }
  0xb6   : > { %v468_v26 = vpop.permute.xlu1 %467  ;;  %v512_v27 = vpop.permute.xlu0 %511 }
  0xb7   : > { %v481_v11 = vmul.f32 %v473_v45, %v468_v26  ;;  %v525_v12 = vmul.f32 %v517_v48, %v512_v27 }
  0xb9   : > { %v533_v25 = vadd.f32 %v525_v12, %v481_v11 }
  0xbb   : > { %v488_v28 = vpop.permute.xlu1 %487  ;;  %v540_v29 = vpop.permute.xlu0 %539 }
  0xbc   : > { %v519_v3 = vmul.f32 %v517_v48, %v488_v28  ;;  %v571_v14 = vmul.f32 %v2240_v49, %v540_v29 }
  0xbf   : > { %v492_v30 = vpop.permute.xlu1 %491  ;;  %v2220_v31 = vpop.permute.xlu0 %551 }
  0xc0   : > { %v520_v15 = vmul.f32 %v517_v48, %v492_v30 }
  0xc2   : > { %v528_v28 = vadd.f32 %v520_v15, %v476_v19 }
  0xc3   : > { %v500_v33 = vpop.permute.xlu1 %499  ;;  %v2222_v34 = vpop.permute.xlu0 %559 }
  0xc4   : > { %v522_v29 = vmul.f32 %v517_v48, %v500_v33 }
  0xc7   : > { %v2226_v36 = vpop.permute.xlu1 %507 }
  0xc8   : > { %v433_v38 = vpop.permute.xlu0 %432 }
  0xc9   : > { %v474_v50 = vmul.f32 %v473_v45, %v433_v38 }
  0xcb   : > { %v526_v57 = vadd.f32 %v518_v51, %v474_v50  ;;  %v574_v50 = vmul.f32 %v2240_v49, %v2220_v31  ;;  %v524_v51 = vmul.f32 %v517_v48, %v2226_v36 }
  0xcc   : > { %v536_v41 = vpop.permute.xlu1 %535  ;;  %v438_v42 = vpop.permute.xlu0 %437 }
  0xcd   : > { %v570_v52 = vmul.f32 %v2240_v49, %v536_v41  ;;  %v475_v62 = vmul.f32 %v473_v45, %v438_v42 }
  0xcf   : > { %v578_v59 = vadd.f32 %v570_v52, %v526_v57  ;;  %v527_v8 = vadd.f32 %v519_v3, %v475_v62 }
  0xd0   : > { %v544_v46 = vpop.permute.xlu1 %543  ;;  %v453_v47 = vpop.permute.xlu0 %452 }
  0xd1   : > { %v572_v21 = vmul.f32 %v2240_v49, %v544_v46  ;;  %v478_v22 = vmul.f32 %v473_v45, %v453_v47  ;;  %v579_v24 = vadd.f32 %v571_v14, %v527_v8 }
  0xd3   : > { %v530_v38 = vadd.f32 %v522_v29, %v478_v22  ;;  %v580_v42 = vadd.f32 %v572_v21, %v528_v28  ;;  %v698_v28 = vld [vmem:[#allocation2] sm:$0xff] }
  0xd4   : > { %v548_v53 = vpop.permute.xlu1 %547  ;;  %v463_v54 = vpop.permute.xlu0 %462 }
  0xd5   : > { %v573_v58 = vmul.f32 %v2240_v49, %v548_v53  ;;  %v480_v40 = vmul.f32 %v473_v45, %v463_v54  ;;  %v576_v54 = vmul.f32 %v2240_v49, %v2222_v34 }
  0xd7   : > { %v581_v6 = vadd.f32 %v573_v58, %v529_v1  ;;  %v532_v55 = vadd.f32 %v524_v51, %v480_v40  ;;  %v582_v58 = vadd.f32 %v574_v50, %v530_v38  ;;  %v703_v38 = vld [vmem:[#allocation2 + $0x28] sm:$0xff]  ;;  %v700_v51 = vld [vmem:[#allocation2 + $0x10] sm:$0xff] }
  0xd8   : > { %v556_v63 = vpop.permute.xlu1 %555  ;;  %v597_v0 = vpop.permute.xlu0 %596  ;;  %v699_v40 = vld [vmem:[#allocation2 + $0x8] sm:$0xff] }
  0xd9   : > { %v2244_v2 = vadd.f32 %v597_v0, %v578_v59  ;;  %v575_v4 = vmul.f32 %v2240_v49, %v556_v63  ;;  %v584_v36 = vadd.f32 %v576_v54, %v532_v55  ;;  %v702_v55 = vld [vmem:[#allocation2 + $0x20] sm:$0xff] }
  0xdb   : > { %v1514_v5 = vmul.f32 -1.442695, %v2244_v2  ;;  %v583_v18 = vadd.f32 %v575_v4, %v531_v7 }
  0xdc   : > { %v564_v9 = vpop.permute.xlu1 %563  ;;  %v612_v10 = vpop.permute.xlu0 %611 }
  0xdd   : > { %1887 = vpow2.f32 %v1514_v5  ;;  %v2248_v13 = vadd.f32 %v612_v10, %v581_v6  ;;  %v577_v16 = vmul.f32 %v2240_v49, %v564_v9 }
  0xdf   : > { %v1517_v17 = vmul.f32 -1.442695, %v2248_v13  ;;  %v585_v37 = vadd.f32 %v577_v16, %v533_v25 }
  0xe0   : > { %v622_v23 = vpop.permute.xlu0 %621 }
  0xe1   : > { %1889 = vpow2.f32 %v1517_v17  ;;  %v2255_v26 = vadd.f32 %v622_v23, %v583_v18  ;;  %v602_v27 = vpop.permute.xlu1 %601 }
  0xe2   : > { %v635_v30 = vadd.f32 %v602_v27, %v579_v24 }
  0xe3   : > { %v1519_v32 = vmul.f32 -1.442695, %v2255_v26 }
  0xe4   : > { %v1515_v41 = vmul.f32 -1.442695, %v635_v30  ;;  %v632_v20 = vpop.permute.xlu0 %631 }
  0xe5   : > { %1891 = vpow2.f32 %v1519_v32  ;;  %v641_v46 = vadd.f32 %v632_v20, %v585_v37  ;;  %v607_v47 = vpop.permute.xlu1 %606 }
  0xe6   : > { %1893 = vpow2.f32 %v1515_v41  ;;  %v636_v52 = vadd.f32 %v607_v47, %v580_v42  ;;  %v705_v47 = vld [vmem:[#allocation2 + $0x38] sm:$0xff] }
  0xe7   : > { %v1888_v33 = vpop.eup %1887  ;;  %v1521_v53 = vmul.f32 -1.442695, %v641_v46 }
  0xe8   : > { %v666_v56 = vadd.f32 1.0, %v1888_v33  ;;  %v1516_v57 = vmul.f32 -1.442695, %v636_v52 }
  0xe9   : > { %1895 = vpow2.f32 %v1521_v53  ;;  %v617_v45 = vpop.permute.xlu1 %616 }
  0xea   : > { %1897 = vrcp.f32 %v666_v56  ;;  %v638_v59 = vadd.f32 %v617_v45, %v582_v58  ;;  %v704_v58 = vld [vmem:[#allocation2 + $0x30] sm:$0xff] }
  0xeb   : > { %v1890_v60 = vpop.eup %1889  ;;  %1899 = vpow2.f32 %v1516_v57 }
  0xec   : > { %v669_v31 = vadd.f32 1.0, %v1890_v60  ;;  %v1518_v61 = vmul.f32 -1.442695, %v638_v59 }
  0xed   : > { %v627_v48 = vpop.permute.xlu1 %626 }
  0xee   : > { %1901 = vrcp.f32 %v669_v31  ;;  %v640_v62 = vadd.f32 %v627_v48, %v584_v36 }
  0xef   : > { %v1892_v63 = vpop.eup %1891  ;;  %1903 = vpow2.f32 %v1518_v61  ;;  %v2021_v61 = vmov (!%p1522_p1), 0  }
  0xf0   : > { %v1894_v0 = vpop.eup %1893  ;;  %v671_v1 = vadd.f32 1.0, %v1892_v63  ;;  %v1520_v3 = vmul.f32 -1.442695, %v640_v62  ;;  %1920 = vset.pattern.permute.xlu1 (!%p1522_p1), %v2021_v61  ;;  %1919 = vset.pattern.permute.xlu0 (!%p1522_p1), %v2021_v61  ;;  %v975_v61 = vld [vmem:[%s2981_s5 + $0xf0] sm:$0xff] (!%p1522_p1) }
  0xf1   : > { %v667_v4 = vadd.f32 1.0, %v1894_v0  ;;  %v946_v0 = vld [vmem:[%s2981_s5 + $0x8] sm:$0xff] (!%p1522_p1) }
  0xf2   : > { %1905 = vrcp.f32 %v671_v1 }
  0xf3   : > { %v1896_v5 = vpop.eup %1895  ;;  %1907 = vrcp.f32 %v667_v4  ;;  %v948_v4 = vld [vmem:[%s2981_s5 + $0x18] sm:$0xff] (!%p1522_p1) }
  0xf4   : > { %v1898_v34 = vpop.eup %1897  ;;  %v673_v49 = vadd.f32 1.0, %v1896_v5  ;;  %1909 = vpow2.f32 %v1520_v3  ;;  %v945_v5 = vld [vmem:[%s2981_s5] sm:$0xff] (!%p1522_p1) }
  0xf5   : > { %v1900_v6 = vpop.eup %1899  ;;  %v690_v7 = vmul.f32 %v1898_v34, %v2244_v2  ;;  %v947_v34 = vld [vmem:[%s2981_s5 + $0x10] sm:$0xff] (!%p1522_p1) }
  0xf6   : > { %1911 = vrcp.f32 %v673_v49  ;;  %v668_v8 = vadd.f32 1.0, %v1900_v6  ;;  %v1613_v6 = vpack.c.bf16 (!%p1522_p1), %v948_v4, %v946_v0  ;;  %v977_v0 = vld [vmem:[%s2981_s5 + $0x100] sm:$0xff] (!%p1522_p1)  ;;  %v984_v4 = vld [vmem:[%s2981_s5 + $0x138] sm:$0xff] (!%p1522_p1) }
  0xf7   : > { %706 = vadd.xlane.f32.xlu1 %v690_v7  ;;  %v1615_v7 = vpack.c.bf16 (!%p1522_p1), %v947_v34, %v945_v5 }
  0xf8   : > { %v1902_v9 = vpop.eup %1901  ;;  %1913 = vrcp.f32 %v668_v8  ;;  %v950_v8 = vld [vmem:[%s2981_s5 + $0x28] sm:$0xff] (!%p1522_p1)  ;;  %1614 = vmatprep.subr.bf16.mxu0 (!%p1522_p1), %v1613_v6  ;;  %v983_v6 = vld [vmem:[%s2981_s5 + $0x130] sm:$0xff] (!%p1522_p1) }
  0xf9   : > { %v1904_v10 = vpop.eup %1903  ;;  %v693_v11 = vmul.f32 %v1902_v9, %v2248_v13  ;;  %v952_v9 = vld [vmem:[%s2981_s5 + $0x38] sm:$0xff] (!%p1522_p1)  ;;  %1616 = vmatpush1.bf16.msra.mxu0 (!%p1522_p1), %v1615_v7  ;;  %v986_v7 = vld [vmem:[%s2981_s5 + $0x148] sm:$0xff] (!%p1522_p1) }
  0xfa   : > { %v670_v12 = vadd.f32 1.0, %v1904_v10  ;;  %v1617_v10 = vpack.c.bf16 (!%p1522_p1), %v952_v9, %v950_v8  ;;  %v988_v8 = vld [vmem:[%s2981_s5 + $0x158] sm:$0xff] (!%p1522_p1) }
  0xfb   : > { %712 = vadd.xlane.f32.xlu1 %v693_v11  ;;  %v949_v11 = vld [vmem:[%s2981_s5 + $0x20] sm:$0xff] (!%p1522_p1) }
  0xfc   : > { %v1906_v14 = vpop.eup %1905  ;;  %1915 = vrcp.f32 %v670_v12  ;;  %v951_v12 = vld [vmem:[%s2981_s5 + $0x30] sm:$0xff] (!%p1522_p1)  ;;  %1618 = vmatprep.subr.bf16.mxu0 (!%p1522_p1), %v1617_v10  ;;  %v1653_v10 = vpack.c.bf16 (!%p1522_p1), %v988_v8, %v986_v7 }
  0xfd   : > { %v1908_v15 = vpop.eup %1907  ;;  %v695_v16 = vmul.f32 %v1906_v14, %v2255_v26  ;;  %v954_v14 = vld [vmem:[%s2981_s5 + $0x48] sm:$0xff] (!%p1522_p1)  ;;  %v1235_v8 = vld [vmem:[%s2983_s7 + $0x30] sm:$0xff] (!%p1522_p1) }
  0xfe   : > { %v1910_v17 = vpop.eup %1909  ;;  %v691_v18 = vmul.f32 %v1908_v15, %v635_v30  ;;  %v701_v30 = vld [vmem:[#allocation2 + $0x18] sm:$0xff] }
  0xff   : > { %v672_v19 = vadd.f32 1.0, %v1910_v17  ;;  %716 = vadd.xlane.f32.xlu1 %v695_v16  ;;  %v956_v15 = vld [vmem:[%s2981_s5 + $0x58] sm:$0xff] (!%p1522_p1) }
 0x100   : > { %v1912_v2 = vpop.eup %1911  ;;  %708 = vadd.xlane.f32.xlu0 %v691_v18 }
 0x101   : > { %1917 = vrcp.f32 %v672_v19  ;;  %v697_v21 = vmul.f32 %v1912_v2, %v641_v46  ;;  %v1619_v2 = vpack.c.bf16 (!%p1522_p1), %v951_v12, %v949_v11  ;;  %v985_v11 = vld [vmem:[%s2981_s5 + $0x140] sm:$0xff] (!%p1522_p1)  ;;  %v987_v12 = vld [vmem:[%s2981_s5 + $0x150] sm:$0xff] (!%p1522_p1) }
 0x102   : > { %v1914_v22 = vpop.eup %1913 }
 0x103   : > { %720 = vadd.xlane.f32.xlu1 %v697_v21  ;;  %v692_v23 = vmul.f32 %v1914_v22, %v636_v52  ;;  %v1621_v21 = vpack.c.bf16 (!%p1522_p1), %v956_v15, %v954_v14  ;;  %v953_v22 = vld [vmem:[%s2981_s5 + $0x40] sm:$0xff] (!%p1522_p1)  ;;  %1620 = vmatpush1.bf16.msra.mxu0 (!%p1522_p1), %v1619_v2  ;;  %v990_v14 = vld [vmem:[%s2981_s5 + $0x168] sm:$0xff] (!%p1522_p1)  ;;  %v992_v15 = vld [vmem:[%s2981_s5 + $0x178] sm:$0xff] (!%p1522_p1) }
 0x104   : > { %v994_v2 = vld [vmem:[%s2981_s5 + $0x188] sm:$0xff] (!%p1522_p1) }
 0x105   : > { %710 = vadd.xlane.f32.xlu0 %v692_v23  ;;  %v955_v23 = vld [vmem:[%s2981_s5 + $0x50] sm:$0xff] (!%p1522_p1)  ;;  %1622 = vmatprep.subr.bf16.mxu0 (!%p1522_p1), %v1621_v21  ;;  %v996_v21 = vld [vmem:[%s2981_s5 + $0x198] sm:$0xff] (!%p1522_p1) }
 0x106   : > { %v1916_v13 = vpop.eup %1915 }
 0x107   : > { %v694_v24 = vmul.f32 %v1916_v13, %v638_v59  ;;  %v958_v13 = vld [vmem:[%s2981_s5 + $0x68] sm:$0xff] (!%p1522_p1) }
 0x109   : > { %714 = vadd.xlane.f32.xlu0 %v694_v24  ;;  %v960_v24 = vld [vmem:[%s2981_s5 + $0x78] sm:$0xff] (!%p1522_p1) }
 0x10b   : > { %v1918_v25 = vpop.eup %1917 }
 0x10c   : > { %v696_v27 = vmul.f32 %v1918_v25, %v640_v62 }
 0x10e   : > { %718 = vadd.xlane.f32.xlu0 %v696_v27 }
 0x184   : > { %v707_v26 = vpop.xlane.xlu1 %706 }
 0x185   : > { %v722_v29 = vadd.f32 %v707_v26, %v698_v28  ;;  %v1623_v28 = vpack.c.bf16 (!%p1522_p1), %v955_v23, %v953_v22  ;;  %v1625_v26 = vpack.c.bf16 (!%p1522_p1), %v960_v24, %v958_v13  ;;  %v1661_v23 = vpack.c.bf16 (!%p1522_p1), %v996_v21, %v994_v2  ;;  %v993_v13 = vld [vmem:[%s2981_s5 + $0x180] sm:$0xff] (!%p1522_p1)  ;;  %v995_v24 = vld [vmem:[%s2981_s5 + $0x190] sm:$0xff] (!%p1522_p1) }
 0x186   : > { %v1239_v21 = vld [vmem:[%s2983_s7 + $0x50] sm:$0xff] (!%p1522_p1) }
 0x187   : > { %731 = vst.msk [vmem:[#allocation2] sm:$0xff] %vm730_vm1, %v722_v29  ;;  %v957_v29 = vld [vmem:[%s2981_s5 + $0x60] sm:$0xff] (!%p1522_p1)  ;;  %1624 = vmatpush1.bf16.msra.mxu0 (!%p1522_p1), %v1623_v28  ;;  %v1663_v28 = vpack.c.bf16 (!%p1522_p1), %v995_v24, %v993_v13  ;;  %v1258_v13 = vld [vmem:[%s2983_s7 + $0xe8] sm:$0xff] (!%p1522_p1) }
 0x188   : > { %v713_v32 = vpop.xlane.xlu1 %712  ;;  %1626 = vmatprep.subr.bf16.mxu0 (!%p1522_p1), %v1625_v26 }
 0x189   : > { %v725_v37 = vadd.f32 %v713_v32, %v701_v30  ;;  %v959_v30 = vld [vmem:[%s2981_s5 + $0x70] sm:$0xff] (!%p1522_p1)  ;;  %v962_v32 = vld [vmem:[%s2981_s5 + $0x88] sm:$0xff] (!%p1522_p1) }
 0x18b   : > { %734 = vst.msk [vmem:[#allocation2 + $0x18] sm:$0xff] %vm730_vm1, %v725_v37  ;;  %v964_v37 = vld [vmem:[%s2981_s5 + $0x98] sm:$0xff] (!%p1522_p1) }
 0x18c   : > { %v717_v41 = vpop.xlane.xlu1 %716 }
 0x18d   : > { %v727_v20 = vadd.f32 %v717_v41, %v703_v38  ;;  %v709_v42 = vpop.xlane.xlu0 %708  ;;  %v1627_v38 = vpack.c.bf16 (!%p1522_p1), %v959_v30, %v957_v29  ;;  %v961_v41 = vld [vmem:[%s2981_s5 + $0x80] sm:$0xff] (!%p1522_p1)  ;;  %v999_v30 = vld [vmem:[%s2981_s5 + $0x1b0] sm:$0xff] (!%p1522_p1) }
 0x18e   : > { %v723_v46 = vadd.f32 %v709_v42, %v699_v40  ;;  %v743_v60 = vld [vmem:[#allocation2] sm:$0xff] (!%p1522_p1)  ;;  %v1629_v40 = vpack.c.bf16 (!%p1522_p1), %v964_v37, %v962_v32  ;;  %v966_v42 = vld [vmem:[%s2981_s5 + $0xa8] sm:$0xff] (!%p1522_p1)  ;;  %v1004_v37 = vld [vmem:[%s2981_s5 + $0x1d8] sm:$0xff] (!%p1522_p1) }
 0x18f   : > { %736 = vst.msk [vmem:[#allocation2 + $0x28] sm:$0xff] %vm730_vm1, %v727_v20  ;;  %v751_v48 = vmul.f32 (!%p1522_p1), 0.00390625, %v743_v60  ;;  %v963_v20 = vld [vmem:[%s2981_s5 + $0x90] sm:$0xff] (!%p1522_p1)  ;;  %1628 = vmatpush1.bf16.msra.mxu0 (!%p1522_p1), %v1627_v38  ;;  %v997_v29 = vld [vmem:[%s2981_s5 + $0x1a0] sm:$0xff] (!%p1522_p1)  ;;  %v1002_v32 = vld [vmem:[%s2981_s5 + $0x1c8] sm:$0xff] (!%p1522_p1) }
 0x190   : > { %732 = vst.msk [vmem:[#allocation2 + $0x8] sm:$0xff] %vm730_vm1, %v723_v46  ;;  %v721_v50 = vpop.xlane.xlu1 %720  ;;  %v968_v46 = vld [vmem:[%s2981_s5 + $0xb8] sm:$0xff] (!%p1522_p1)  ;;  %1630 = vmatprep.subr.bf16.mxu0 (!%p1522_p1), %v1629_v40  ;;  %v1667_v38 = vpack.c.bf16 (!%p1522_p1), %v999_v30, %v997_v29  ;;  %v1669_v40 = vpack.c.bf16 (!%p1522_p1), %v1004_v37, %v1002_v32  ;;  %v760_v29 = vld [vmem:[%s2979_s3 + $0x8] sm:$0xff] (!%p1522_p1)  ;;  %v767_v30 = vld [vmem:[%s2979_s3 + $0x40] sm:$0xff] (!%p1522_p1) }
 0x191   : > { %v729_v52 = vadd.f32 %v721_v50, %v705_v47  ;;  %793 = vperm.xlu0 (!%p1522_p1), %1919, %v751_v48   ;;  %v1631_v47 = vpack.c.bf16 (!%p1522_p1), %v963_v20, %v961_v41  ;;  %v1633_v50 = vpack.c.bf16 (!%p1522_p1), %v968_v46, %v966_v42  ;;  %v980_v48 = vld [vmem:[%s2981_s5 + $0x118] sm:$0xff] (!%p1522_p1)  ;;  %v1001_v41 = vld [vmem:[%s2981_s5 + $0x1c0] sm:$0xff] (!%p1522_p1)  ;;  %v1003_v20 = vld [vmem:[%s2981_s5 + $0x1d0] sm:$0xff] (!%p1522_p1) }
 0x192   : > { %v711_v33 = vpop.xlane.xlu0 %710  ;;  %v746_v31 = vld [vmem:[#allocation2 + $0x18] sm:$0xff] (!%p1522_p1)  ;;  %v1006_v42 = vld [vmem:[%s2981_s5 + $0x1e8] sm:$0xff] (!%p1522_p1)  ;;  %v761_v32 = vld [vmem:[%s2979_s3 + $0x10] sm:$0xff] (!%p1522_p1) }
 0x193   : > { %738 = vst.msk [vmem:[#allocation2 + $0x38] sm:$0xff] %vm730_vm1, %v729_v52  ;;  %v724_v53 = vadd.f32 %v711_v33, %v700_v51  ;;  %v754_v1 = vmul.f32 (!%p1522_p1), 0.00390625, %v746_v31  ;;  %v965_v51 = vld [vmem:[%s2981_s5 + $0xa0] sm:$0xff] (!%p1522_p1)  ;;  %v967_v52 = vld [vmem:[%s2981_s5 + $0xb0] sm:$0xff] (!%p1522_p1)  ;;  %v970_v33 = vld [vmem:[%s2981_s5 + $0xc8] sm:$0xff] (!%p1522_p1)  ;;  %1632 = vmatpush1.bf16.msra.mxu0 (!%p1522_p1), %v1631_v47  ;;  %v1671_v47 = vpack.c.bf16 (!%p1522_p1), %v1003_v20, %v1001_v41 }
 0x194   : > { %1634 = vmatprep.subr.bf16.mxu0 (!%p1522_p1), %v1633_v50  ;;  %v973_v31 = vld [vmem:[%s2981_s5 + $0xe0] sm:$0xff] (!%p1522_p1)  ;;  %v1008_v46 = vld [vmem:[%s2981_s5 + $0x1f8] sm:$0xff] (!%p1522_p1)  ;;  %v765_v41 = vld [vmem:[%s2979_s3 + $0x30] sm:$0xff] (!%p1522_p1) }
 0x195   : > { %733 = vst.msk [vmem:[#allocation2 + $0x10] sm:$0xff] %vm730_vm1, %v724_v53  ;;  %v972_v53 = vld [vmem:[%s2981_s5 + $0xd8] sm:$0xff] (!%p1522_p1)  ;;  %v1673_v50 = vpack.c.bf16 (!%p1522_p1), %v1008_v46, %v1006_v42  ;;  %v768_v42 = vld [vmem:[%s2979_s3 + $0x48] sm:$0xff] (!%p1522_p1)  ;;  %v769_v46 = vld [vmem:[%s2979_s3 + $0x50] sm:$0xff] (!%p1522_p1) }
 0x196   : > { %v715_v56 = vpop.xlane.xlu0 %714  ;;  %v748_v63 = vld [vmem:[#allocation2 + $0x28] sm:$0xff] (!%p1522_p1)  ;;  %v762_v37 = vld [vmem:[%s2979_s3 + $0x18] sm:$0xff] (!%p1522_p1) }
 0x197   : > { %v726_v57 = vadd.f32 %v715_v56, %v702_v55  ;;  %v744_v62 = vld [vmem:[#allocation2 + $0x8] sm:$0xff] (!%p1522_p1)  ;;  %v756_v16 = vmul.f32 (!%p1522_p1), 0.00390625, %v748_v63  ;;  %v1635_v55 = vpack.c.bf16 (!%p1522_p1), %v967_v52, %v965_v51  ;;  %v1637_v56 = vpack.c.bf16 (!%p1522_p1), %v972_v53, %v970_v33  ;;  %v1005_v51 = vld [vmem:[%s2981_s5 + $0x1e0] sm:$0xff] (!%p1522_p1)  ;;  %v1007_v52 = vld [vmem:[%s2981_s5 + $0x1f0] sm:$0xff] (!%p1522_p1) }
 0x198   : > { %742 = sbr.rel (%p1522_p1) target bundleno = 1293 (0x50d), region = 72  ;;  %v752_v3 = vmul.f32 (!%p1522_p1), 0.00390625, %v744_v62  ;;  %v1643_v62 = vpack.c.bf16 (!%p1522_p1), %v975_v61, %v973_v31  ;;  %v1010_v33 = vld [vmem:[%s2981_s5 + $0x208] sm:$0xff] (!%p1522_p1)  ;;  %v1012_v53 = vld [vmem:[%s2981_s5 + $0x218] sm:$0xff] (!%p1522_p1) }
 0x199   : > { %735 = vst.msk [vmem:[#allocation2 + $0x20] sm:$0xff] %vm730_vm1, %v726_v57  ;;  %v969_v57 = vld [vmem:[%s2981_s5 + $0xc0] sm:$0xff] (!%p1522_p1)  ;;  %1636 = vmatpush1.bf16.msra.mxu0 (!%p1522_p1), %v1635_v55  ;;  %v1675_v55 = vpack.c.bf16 (!%p1522_p1), %v1007_v52, %v1005_v51  ;;  %v1248_v31 = vld [vmem:[%s2983_s7 + $0x98] sm:$0xff] (!%p1522_p1) }
 0x19a   : > { %798 = vperm.xlu0 (!%p1522_p1), %1919, %v752_v3   ;;  %v750_v18 = vld [vmem:[#allocation2 + $0x38] sm:$0xff] (!%p1522_p1)  ;;  %1638 = vmatprep.subr.bf16.mxu0 (!%p1522_p1), %v1637_v56  ;;  %v982_v3 = vld [vmem:[%s2981_s5 + $0x128] sm:$0xff] (!%p1522_p1)  ;;  %v1677_v56 = vpack.c.bf16 (!%p1522_p1), %v1012_v53, %v1010_v33 }
 0x19b   : > { %v719_v45 = vpop.xlane.xlu0 %718  ;;  %v758_v25 = vmul.f32 (!%p1522_p1), 0.00390625, %v750_v18  ;;  %v1649_v34 = vpack.c.bf16 (!%p1522_p1), %v984_v4, %v982_v3  ;;  %v989_v18 = vld [vmem:[%s2981_s5 + $0x160] sm:$0xff] (!%p1522_p1)  ;;  %v766_v20 = vld [vmem:[%s2979_s3 + $0x38] sm:$0xff] (!%p1522_p1) }
 0x19c   : > { %v728_v54 = vadd.f32 %v719_v45, %v704_v58  ;;  %v745_v59 = vld [vmem:[#allocation2 + $0x10] sm:$0xff] (!%p1522_p1)  ;;  %v974_v45 = vld [vmem:[%s2981_s5 + $0xe8] sm:$0xff] (!%p1522_p1)  ;;  %v1233_v4 = vld [vmem:[%s2983_s7 + $0x20] sm:$0xff] (!%p1522_p1) }
 0x19d   : > { %v753_v36 = vmul.f32 (!%p1522_p1), 0.00390625, %v745_v59  ;;  %v971_v58 = vld [vmem:[%s2981_s5 + $0xd0] sm:$0xff] (!%p1522_p1) }
 0x19e   : > { %737 = vst.msk [vmem:[#allocation2 + $0x30] sm:$0xff] %vm730_vm1, %v728_v54  ;;  %v976_v54 = vld [vmem:[%s2981_s5 + $0xf8] sm:$0xff] (!%p1522_p1)  ;;  %v1639_v59 = vpack.c.bf16 (!%p1522_p1), %v971_v58, %v969_v57  ;;  %v1245_v57 = vld [vmem:[%s2983_s7 + $0x80] sm:$0xff] (!%p1522_p1)  ;;  %v1246_v58 = vld [vmem:[%s2983_s7 + $0x88] sm:$0xff] (!%p1522_p1) }
 0x19f   : > { %803 = vperm.xlu1 %1920, %v753_v36   ;;  %v1641_v60 = vpack.c.bf16 %v976_v54, %v974_v45  ;;  %v978_v36 = vld [vmem:[%s2981_s5 + $0x108] sm:$0xff]  ;;  %v1229_v45 = vld [vmem:[%s2983_s7] sm:$0xff]  ;;  %v1741_v54 = vpack.c.bf16 %v1246_v58, %v1245_v57  ;;  %v773_v58 = vld [vmem:[%s2979_s3 + $0x70] sm:$0xff] }
 0x1a0   : > { %v747_v49 = vld [vmem:[#allocation2 + $0x20] sm:$0xff]  ;;  %1640 = vmatpush1.bf16.msra.mxu0 %v1639_v59  ;;  %v1645_v63 = vpack.c.bf16 %v980_v48, %v978_v36  ;;  %v1230_v59 = vld [vmem:[%s2983_s7 + $0x8] sm:$0xff]  ;;  %v1231_v48 = vld [vmem:[%s2983_s7 + $0x10] sm:$0xff] }
 0x1a1   : > { %v755_v17 = vmul.f32 0.00390625, %v747_v49  ;;  %1642 = vmatprep.subr.bf16.mxu0 %v1641_v60  ;;  %v981_v49 = vld [vmem:[%s2981_s5 + $0x120] sm:$0xff]  ;;  %v1247_v60 = vld [vmem:[%s2983_s7 + $0x90] sm:$0xff]  ;;  %v1743_v61 = vpack.c.bf16 %v1230_v59, %v1229_v45  ;;  %1742 = vmatprep.subr.bf16.mxu1 %v1741_v54  ;;  %v772_v57 = vld [vmem:[%s2979_s3 + $0x68] sm:$0xff] }
 0x1a2   : > { %v1651_v9 = vpack.c.bf16 %v983_v6, %v981_v49  ;;  %v1745_v36 = vpack.c.bf16 %v1248_v31, %v1247_v60  ;;  %v1252_v49 = vld [vmem:[%s2983_s7 + $0xb8] sm:$0xff] }
 0x1a3   : > { %808 = vperm.xlu1 %1920, %v754_v1   ;;  %813 = vperm.xlu0 %1919, %v755_v17   ;;  %v979_v1 = vld [vmem:[%s2981_s5 + $0x110] sm:$0xff]  ;;  %v1657_v17 = vpack.c.bf16 %v992_v15, %v990_v14  ;;  %v1237_v15 = vld [vmem:[%s2983_s7 + $0x40] sm:$0xff]  ;;  %v774_v45 = vld [vmem:[%s2979_s3 + $0x78] sm:$0xff] }
 0x1a4   : > { %1644 = vmatpush1.bf16.msra.mxu0 %v1643_v62  ;;  %v1647_v5 = vpack.c.bf16 %v979_v1, %v977_v0  ;;  %v1232_v62 = vld [vmem:[%s2983_s7 + $0x18] sm:$0xff]  ;;  %v1250_v0 = vld [vmem:[%s2983_s7 + $0xa8] sm:$0xff]  ;;  %1744 = vmatpush3.bf16.msra.mxu1 %v1743_v61 }
 0x1a5   : > { %v749_v19 = vld [vmem:[#allocation2 + $0x30] sm:$0xff]  ;;  %1646 = vmatprep.subr.bf16.mxu0 %v1645_v63  ;;  %v1249_v63 = vld [vmem:[%s2983_s7 + $0xa0] sm:$0xff]  ;;  %v1747_v1 = vpack.c.bf16 %v1232_v62, %v1231_v48  ;;  %1746 = vmatprep.subr.bf16.mxu1 %v1745_v36 }
 0x1a6   : > { %v757_v27 = vmul.f32 0.00390625, %v749_v19  ;;  %v991_v19 = vld [vmem:[%s2981_s5 + $0x170] sm:$0xff]  ;;  %v1749_v3 = vpack.c.bf16 %v1250_v0, %v1249_v63  ;;  %v775_v63 = vld [vmem:[%s2979_s3 + $0x80] sm:$0xff] }
 0x1a7   : > { %818 = vperm.xlu1 %1920, %v756_v16   ;;  %v1655_v16 = vpack.c.bf16 %v987_v12, %v985_v11  ;;  %v1659_v22 = vpack.c.bf16 %v991_v19, %v989_v18  ;;  %v1254_v11 = vld [vmem:[%s2983_s7 + $0xc8] sm:$0xff]  ;;  %v1256_v18 = vld [vmem:[%s2983_s7 + $0xd8] sm:$0xff] }
 0x1a8   : > { %823 = vperm.xlu0 %1919, %v757_v27   ;;  %1648 = vmatpush1.bf16.msra.mxu0 %v1647_v5  ;;  %v1000_v27 = vld [vmem:[%s2981_s5 + $0x1b8] sm:$0xff]  ;;  %v1234_v5 = vld [vmem:[%s2983_s7 + $0x28] sm:$0xff] }
 0x1a9   : > { %1650 = vmatprep.subr.bf16.mxu0 %v1649_v34  ;;  %v1251_v34 = vld [vmem:[%s2983_s7 + $0xb0] sm:$0xff]  ;;  %1748 = vmatpush3.bf16.msra.mxu1 %v1747_v1  ;;  %v1751_v6 = vpack.c.bf16 %v1234_v5, %v1233_v4 }
 0x1aa   : > { %1750 = vmatprep.subr.bf16.mxu1 %v1749_v3  ;;  %v1753_v7 = vpack.c.bf16 %v1252_v49, %v1251_v34  ;;  %v776_v34 = vld [vmem:[%s2979_s3 + $0x88] sm:$0xff]  ;;  %v777_v49 = vld [vmem:[%s2979_s3 + $0x90] sm:$0xff] }
 0x1ab   : > { %828 = vperm.xlu1 %1920, %v758_v25   ;;  %v998_v25 = vld [vmem:[%s2981_s5 + $0x1a8] sm:$0xff] }
 0x1ac   : > { %1652 = vmatpush1.bf16.msra.mxu0 %v1651_v9  ;;  %v1665_v26 = vpack.c.bf16 %v1000_v27, %v998_v25  ;;  %v1236_v9 = vld [vmem:[%s2983_s7 + $0x38] sm:$0xff] }
 0x1ad   : > { %1654 = vmatprep.subr.bf16.mxu0 %v1653_v10  ;;  %v1253_v10 = vld [vmem:[%s2983_s7 + $0xc0] sm:$0xff]  ;;  %1752 = vmatpush3.bf16.msra.mxu1 %v1751_v6  ;;  %v1755_v12 = vpack.c.bf16 %v1236_v9, %v1235_v8  ;;  %v778_v6 = vld [vmem:[%s2979_s3 + $0x98] sm:$0xff] }
 0x1ae   : > { %1754 = vmatprep.subr.bf16.mxu1 %v1753_v7  ;;  %v1757_v14 = vpack.c.bf16 %v1254_v11, %v1253_v10 }
 0x1b0   : > { %1656 = vmatpush1.bf16.msra.mxu0 %v1655_v16  ;;  %v1238_v16 = vld [vmem:[%s2983_s7 + $0x48] sm:$0xff] }
 0x1b1   : > { %1658 = vmatprep.subr.bf16.mxu0 %v1657_v17  ;;  %v1255_v17 = vld [vmem:[%s2983_s7 + $0xd0] sm:$0xff]  ;;  %1756 = vmatpush3.bf16.msra.mxu1 %v1755_v12  ;;  %v1759_v19 = vpack.c.bf16 %v1238_v16, %v1237_v15  ;;  %v779_v12 = vld [vmem:[%s2979_s3 + $0xa0] sm:$0xff] }
 0x1b2   : > { %1758 = vmatprep.subr.bf16.mxu1 %v1757_v14  ;;  %v1761_v2 = vpack.c.bf16 %v1256_v18, %v1255_v17  ;;  %v780_v18 = vld [vmem:[%s2979_s3 + $0xa8] sm:$0xff] }
 0x1b4   : > { %1660 = vmatpush1.bf16.msra.mxu0 %v1659_v22  ;;  %v1240_v22 = vld [vmem:[%s2983_s7 + $0x58] sm:$0xff] }
 0x1b5   : > { %1662 = vmatprep.subr.bf16.mxu0 %v1661_v23  ;;  %v1257_v23 = vld [vmem:[%s2983_s7 + $0xe0] sm:$0xff]  ;;  %1760 = vmatpush3.bf16.msra.mxu1 %v1759_v19  ;;  %v1763_v24 = vpack.c.bf16 %v1240_v22, %v1239_v21  ;;  %v781_v19 = vld [vmem:[%s2979_s3 + $0xb0] sm:$0xff] }
 0x1b6   : > { %1762 = vmatprep.subr.bf16.mxu1 %v1761_v2  ;;  %v1765_v25 = vpack.c.bf16 %v1258_v13, %v1257_v23  ;;  %v782_v2 = vld [vmem:[%s2979_s3 + $0xb8] sm:$0xff] }
 0x1b8   : > { %1664 = vmatpush1.bf16.msra.mxu0 %v1663_v28 }
 0x1b9   : > { %1666 = vmatprep.subr.bf16.mxu0 %v1665_v26  ;;  %1764 = vmatpush3.bf16.msra.mxu1 %v1763_v24  ;;  %v759_v26 = vld [vmem:[%s2979_s3] sm:$0xff] }
 0x1ba   : > { %1766 = vmatprep.subr.bf16.mxu1 %v1765_v25  ;;  %v783_v24 = vld [vmem:[%s2979_s3 + $0xc0] sm:$0xff] }
 0x1bc   : > { %1668 = vmatpush1.bf16.msra.mxu0 %v1667_v38  ;;  %v763_v38 = vld [vmem:[%s2979_s3 + $0x20] sm:$0xff] }
 0x1bd   : > { %1670 = vmatprep.subr.bf16.mxu0 %v1669_v40  ;;  %v764_v40 = vld [vmem:[%s2979_s3 + $0x28] sm:$0xff] }
 0x1c0   : > { %1672 = vmatpush1.bf16.msra.mxu0 %v1671_v47  ;;  %v770_v47 = vld [vmem:[%s2979_s3 + $0x58] sm:$0xff] }
 0x1c1   : > { %1674 = vmatprep.subr.bf16.mxu0 %v1673_v50 }
 0x1c4   : > { %1676 = vmatpush1.bf16.msra.mxu0 %v1675_v55 }
 0x1c5   : > { %1678 = vmatprep.subr.bf16.mxu0 %v1677_v56  ;;  %v771_v56 = vld [vmem:[%s2979_s3 + $0x60] sm:$0xff] }
 0x210   : > { %v794_v28 = vpop.permute.xlu0 %793 }
 0x211   : > { %v831_v52 = vmul.f32 %v794_v28, %v759_v26  ;;  %v832_v33 = vmul.f32 %v794_v28, %v760_v29  ;;  %v833_v53 = vmul.f32 %v794_v28, %v761_v32  ;;  %v834_v55 = vmul.f32 %v794_v28, %v762_v37  ;;  %v784_v29 = vld [vmem:[%s2979_s3 + $0xc8] sm:$0xff]  ;;  %v786_v32 = vld [vmem:[%s2979_s3 + $0xd8] sm:$0xff] }
 0x219   : > { %v799_v51 = vpop.permute.xlu0 %798 }
 0x21a   : > { %v835_v54 = vmul.f32 %v799_v51, %v763_v38  ;;  %v836_v59 = vmul.f32 %v799_v51, %v764_v40  ;;  %v837_v60 = vmul.f32 %v799_v51, %v765_v41  ;;  %v838_v31 = vmul.f32 %v799_v51, %v766_v20 }
 0x21c   : > { %v863_v0 = vadd.f32 %v835_v54, %v831_v52  ;;  %v876_v1 = vadd.f32 %v836_v59, %v832_v33  ;;  %v889_v3 = vadd.f32 %v837_v60, %v833_v53  ;;  %v902_v4 = vadd.f32 %v838_v31, %v834_v55  ;;  %v788_v52 = vld [vmem:[%s2979_s3 + $0xe8] sm:$0xff]  ;;  %v789_v33 = vld [vmem:[%s2979_s3 + $0xf0] sm:$0xff]  ;;  %v790_v53 = vld [vmem:[%s2979_s3 + $0xf8] sm:$0xff] }
 0x21e   : > { %v804_v27 = vpop.permute.xlu1 %803 }
 0x21f   : > { %v839_v61 = vmul.f32 %v804_v27, %v767_v30  ;;  %v840_v36 = vmul.f32 %v804_v27, %v768_v42  ;;  %v841_v48 = vmul.f32 %v804_v27, %v769_v46  ;;  %v842_v62 = vmul.f32 %v804_v27, %v770_v47  ;;  %v785_v30 = vld [vmem:[%s2979_s3 + $0xd0] sm:$0xff]  ;;  %v787_v42 = vld [vmem:[%s2979_s3 + $0xe0] sm:$0xff] }
 0x221   : > { %v864_v14 = vadd.f32 %v863_v0, %v839_v61  ;;  %v877_v15 = vadd.f32 %v876_v1, %v840_v36  ;;  %v890_v16 = vadd.f32 %v889_v3, %v841_v48  ;;  %v903_v17 = vadd.f32 %v902_v4, %v842_v62 }
 0x222   : > { %v809_v50 = vpop.permute.xlu1 %808  ;;  %v814_v7 = vpop.permute.xlu0 %813 }
 0x223   : > { %v843_v8 = vmul.f32 %v809_v50, %v771_v56  ;;  %v844_v9 = vmul.f32 %v809_v50, %v772_v57  ;;  %v845_v10 = vmul.f32 %v809_v50, %v773_v58  ;;  %v846_v11 = vmul.f32 %v809_v50, %v774_v45 }
 0x224   : > { %v847_v21 = vmul.f32 %v814_v7, %v775_v63  ;;  %v848_v22 = vmul.f32 %v814_v7, %v776_v34  ;;  %v849_v23 = vmul.f32 %v814_v7, %v777_v49  ;;  %v850_v13 = vmul.f32 %v814_v7, %v778_v6 }
 0x225   : > { %v865_v25 = vadd.f32 %v864_v14, %v843_v8  ;;  %v878_v27 = vadd.f32 %v877_v15, %v844_v9  ;;  %v891_v28 = vadd.f32 %v890_v16, %v845_v10  ;;  %v904_v26 = vadd.f32 %v903_v17, %v846_v11 }
 0x226   : > { %v819_v5 = vpop.permute.xlu1 %818  ;;  %v931_v15 = vsub.s32 3, %v2224_v35 }
 0x227   : > { %v824_v37 = vpop.permute.xlu0 %823  ;;  %v851_v38 = vmul.f32 %v819_v5, %v779_v12  ;;  %v852_v40 = vmul.f32 %v819_v5, %v780_v18  ;;  %v853_v41 = vmul.f32 %v819_v5, %v781_v19  ;;  %v854_v20 = vmul.f32 %v819_v5, %v782_v2  ;;  %v915_v18 = vld [vmem:[%s2980_s4] sm:$0xf] }
 0x228   : > { %v866_v46 = vadd.f32 %v865_v25, %v847_v21  ;;  %v879_v47 = vadd.f32 %v878_v27, %v848_v22  ;;  %v892_v50 = vadd.f32 %v891_v28, %v849_v23  ;;  %v905_v51 = vadd.f32 %v904_v26, %v850_v13 }
 0x229   : > { %v855_v56 = vmul.f32 %v824_v37, %v783_v24  ;;  %v856_v57 = vmul.f32 %v824_v37, %v784_v29  ;;  %v857_v58 = vmul.f32 %v824_v37, %v785_v30  ;;  %v858_v45 = vmul.f32 %v824_v37, %v786_v32 }
 0x22a   : > { %v829_v55 = vpop.permute.xlu1 %828  ;;  %v867_v54 = vadd.f32 %v866_v46, %v851_v38  ;;  %v880_v59 = vadd.f32 %v879_v47, %v852_v40  ;;  %v893_v60 = vadd.f32 %v892_v50, %v853_v41  ;;  %v906_v31 = vadd.f32 %v905_v51, %v854_v20  ;;  %v1009_v20 = vld [vmem:[%s2981_s5 + $0x200] sm:$0xff]  ;;  %v1016_v50 = vld [vmem:[%s2981_s5 + $0x238] sm:$0xff] }
 0x22b   : > { %v859_v61 = vmul.f32 %v829_v55, %v787_v42  ;;  %v860_v36 = vmul.f32 %v829_v55, %v788_v52  ;;  %v861_v48 = vmul.f32 %v829_v55, %v789_v33  ;;  %v862_v62 = vmul.f32 %v829_v55, %v790_v53  ;;  %v1011_v42 = vld [vmem:[%s2981_s5 + $0x210] sm:$0xff] }
 0x22c   : > { %v868_v63 = vadd.f32 %v867_v54, %v855_v56  ;;  %v881_v0 = vadd.f32 %v880_v59, %v856_v57  ;;  %v894_v1 = vadd.f32 %v893_v60, %v857_v58  ;;  %v907_v3 = vadd.f32 %v906_v31, %v858_v45  ;;  %v1013_v56 = vld [vmem:[%s2981_s5 + $0x220] sm:$0xff]  ;;  %v1015_v57 = vld [vmem:[%s2981_s5 + $0x230] sm:$0xff]  ;;  %v1018_v45 = vld [vmem:[%s2981_s5 + $0x248] sm:$0xff] }
 0x22d   : > { %v924_v24 = vrot.slane %v915_v18, %v2233_v43  ;;  %v920_v25 = vrot.slane %v915_v18, %v2230_v39  ;;  %v932_v27 = vrot.slane %v915_v18, %v931_v15  ;;  %v928_v28 = vrot.slane %v915_v18, %v568_v44  ;;  %v1014_v44 = vld [vmem:[%s2981_s5 + $0x228] sm:$0xff]  ;;  %v1020_v54 = vld [vmem:[%s2981_s5 + $0x258] sm:$0xff]  ;;  %v1017_v31 = vld [vmem:[%s2981_s5 + $0x240] sm:$0xff] }
 0x22e   : > { %v869_v4 = vadd.f32 %v868_v63, %v859_v61  ;;  %v882_v5 = vadd.f32 %v881_v0, %v860_v36  ;;  %v895_v34 = vadd.f32 %v894_v1, %v861_v48  ;;  %v908_v49 = vadd.f32 %v907_v3, %v862_v62  ;;  %v1019_v61 = vld [vmem:[%s2981_s5 + $0x250] sm:$0xff]  ;;  %v1022_v36 = vld [vmem:[%s2981_s5 + $0x268] sm:$0xff]  ;;  %v1024_v48 = vld [vmem:[%s2981_s5 + $0x278] sm:$0xff] }
 0x22f   : > { %v1679_v53 = vpack.c.bf16 %v1011_v42, %v1009_v20  ;;  %v1681_v55 = vpack.c.bf16 %v1016_v50, %v1014_v44  ;;  %v1683_v59 = vpack.c.bf16 %v1015_v57, %v1013_v56  ;;  %v1685_v60 = vpack.c.bf16 %v1020_v54, %v1018_v45  ;;  %v1021_v0 = vld [vmem:[%s2981_s5 + $0x260] sm:$0xff]  ;;  %v1023_v1 = vld [vmem:[%s2981_s5 + $0x270] sm:$0xff]  ;;  %v1026_v3 = vld [vmem:[%s2981_s5 + $0x288] sm:$0xff] }
 0x230   : > { %v870_v6 = vrot.slane %v869_v4, 4  ;;  %v896_v7 = vrot.slane %v895_v34, 4  ;;  %v909_v8 = vrot.slane %v908_v49, 4  ;;  %v883_v9 = vrot.slane %v882_v5, 4  ;;  %v1036_v15 = vld [vmem:[%s2981_s5 + $0x2d8] sm:$0xff]  ;;  %v1033_v18 = vld [vmem:[%s2981_s5 + $0x2c0] sm:$0xff] }
 0x231   : > { %v1687_v62 = vpack.c.bf16 %v1019_v61, %v1017_v31  ;;  %v1689_v63 = vpack.c.bf16 %v1024_v48, %v1022_v36  ;;  %v1047_v20 = vld [vmem:[%s2981_s5 + $0x330] sm:$0xff]  ;;  %v1050_v42 = vld [vmem:[%s2981_s5 + $0x348] sm:$0xff]  ;;  %v1049_v44 = vld [vmem:[%s2981_s5 + $0x340] sm:$0xff] }
 0x232   : > { %v871_v10 = vadd.f32 %v870_v6, %v869_v4  ;;  %v897_v11 = vadd.f32 %v896_v7, %v895_v34  ;;  %v910_v12 = vadd.f32 %v909_v8, %v908_v49  ;;  %v884_v14 = vadd.f32 %v883_v9, %v882_v5  ;;  %v1028_v4 = vld [vmem:[%s2981_s5 + $0x298] sm:$0xff]  ;;  %v1025_v49 = vld [vmem:[%s2981_s5 + $0x280] sm:$0xff]  ;;  %v1027_v6 = vld [vmem:[%s2981_s5 + $0x290] sm:$0xff] }
 0x233   : > { %v1691_v5 = vpack.c.bf16 %v1023_v1, %v1021_v0  ;;  %v1693_v34 = vpack.c.bf16 %v1028_v4, %v1026_v3  ;;  %v1030_v7 = vld [vmem:[%s2981_s5 + $0x2a8] sm:$0xff]  ;;  %v1032_v8 = vld [vmem:[%s2981_s5 + $0x2b8] sm:$0xff]  ;;  %v1695_v9 = vpack.c.bf16 %v1027_v6, %v1025_v49  ;;  %v1051_v50 = vld [vmem:[%s2981_s5 + $0x350] sm:$0xff] }
 0x234   : > { %v898_v16 = vrot.slane %v897_v11, 2  ;;  %v885_v17 = vrot.slane %v884_v14, 2  ;;  %v872_v19 = vrot.slane %v871_v10, 2  ;;  %v911_v2 = vrot.slane %v910_v12, 2  ;;  %v1053_v56 = vld [vmem:[%s2981_s5 + $0x360] sm:$0xff]  ;;  %v1055_v57 = vld [vmem:[%s2981_s5 + $0x370] sm:$0xff] }
 0x235   : > { %v1060_v45 = vld [vmem:[%s2981_s5 + $0x398] sm:$0xff]  ;;  %v1723_v54 = vpack.c.bf16 %v1055_v57, %v1053_v56  ;;  %v1059_v31 = vld [vmem:[%s2981_s5 + $0x390] sm:$0xff]  ;;  %v1062_v61 = vld [vmem:[%s2981_s5 + $0x3a8] sm:$0xff] }
 0x236   : > { %v899_v21 = vadd.f32 %v898_v16, %v897_v11  ;;  %v886_v22 = vadd.f32 %v885_v17, %v884_v14  ;;  %v873_v23 = vadd.f32 %v872_v19, %v871_v10  ;;  %v912_v13 = vadd.f32 %v911_v2, %v910_v12  ;;  %v1029_v11 = vld [vmem:[%s2981_s5 + $0x2a0] sm:$0xff]  ;;  %v1031_v12 = vld [vmem:[%s2981_s5 + $0x2b0] sm:$0xff]  ;;  %v1034_v14 = vld [vmem:[%s2981_s5 + $0x2c8] sm:$0xff] }
 0x237   : > { %v1697_v10 = vpack.c.bf16 %v1032_v8, %v1030_v7  ;;  %v1699_v16 = vpack.c.bf16 %v1031_v12, %v1029_v11  ;;  %v1701_v17 = vpack.c.bf16 %v1036_v15, %v1034_v14  ;;  %v1035_v19 = vld [vmem:[%s2981_s5 + $0x2d0] sm:$0xff]  ;;  %v1038_v2 = vld [vmem:[%s2981_s5 + $0x2e8] sm:$0xff]  ;;  %v1064_v36 = vld [vmem:[%s2981_s5 + $0x3b8] sm:$0xff] }
 0x238   : > { %v887_v26 = vrot.slane %v886_v22, 1  ;;  %v874_v29 = vrot.slane %v873_v23, 1  ;;  %v913_v30 = vrot.slane %v912_v13, 1  ;;  %v900_v32 = vrot.slane %v899_v21, 1  ;;  %v1063_v0 = vld [vmem:[%s2981_s5 + $0x3b0] sm:$0xff]  ;;  %v1066_v1 = vld [vmem:[%s2981_s5 + $0x3c8] sm:$0xff] }
 0x239   : > { %v1068_v3 = vld [vmem:[%s2981_s5 + $0x3d8] sm:$0xff]  ;;  %v1067_v49 = vld [vmem:[%s2981_s5 + $0x3d0] sm:$0xff]  ;;  %v1070_v6 = vld [vmem:[%s2981_s5 + $0x3e8] sm:$0xff] }
 0x23a   : > { %v888_v37 = vadd.f32 %v887_v26, %v886_v22  ;;  %v875_v38 = vadd.f32 %v874_v29, %v873_v23  ;;  %v914_v40 = vadd.f32 %v913_v30, %v912_v13  ;;  %v901_v41 = vadd.f32 %v900_v32, %v899_v21  ;;  %v1040_v21 = vld [vmem:[%s2981_s5 + $0x2f8] sm:$0xff]  ;;  %v1037_v13 = vld [vmem:[%s2981_s5 + $0x2e0] sm:$0xff]  ;;  %v1043_v30 = vld [vmem:[%s2981_s5 + $0x310] sm:$0xff] }
 0x23b   : > { %v1703_v22 = vpack.c.bf16 %v1035_v19, %v1033_v18  ;;  %v1705_v23 = vpack.c.bf16 %v1040_v21, %v1038_v2  ;;  %v1041_v29 = vld [vmem:[%s2981_s5 + $0x300] sm:$0xff]  ;;  %v1046_v32 = vld [vmem:[%s2981_s5 + $0x328] sm:$0xff]  ;;  %v1072_v7 = vld [vmem:[%s2981_s5 + $0x3f8] sm:$0xff] }
 0x23c   : > { %v938_v46 = vadd.f32 %v924_v24, %v888_v37  ;;  %v937_v47 = vadd.f32 %v920_v25, %v875_v38  ;;  %v940_v35 = vadd.f32 %v932_v27, %v914_v40  ;;  %v2667_v51 = vadd.f32 %v928_v28, %v901_v41  ;;  %v1039_v24 = vld [vmem:[%s2981_s5 + $0x2f0] sm:$0xff]  ;;  %v1042_v25 = vld [vmem:[%s2981_s5 + $0x308] sm:$0xff]  ;;  %v1044_v27 = vld [vmem:[%s2981_s5 + $0x318] sm:$0xff] }
 0x23d   : > { %v1707_v28 = vpack.c.bf16 %v1039_v24, %v1037_v13  ;;  %v1709_v26 = vpack.c.bf16 %v1044_v27, %v1042_v25  ;;  %v1048_v37 = vld [vmem:[%s2981_s5 + $0x338] sm:$0xff]  ;;  %v1711_v38 = vpack.c.bf16 %v1043_v30, %v1041_v29  ;;  %v1045_v41 = vld [vmem:[%s2981_s5 + $0x320] sm:$0xff]  ;;  %v1071_v11 = vld [vmem:[%s2981_s5 + $0x3f0] sm:$0xff] }
 0x23e   : > { %v942_v52 = vmax.f32 %v938_v46, 0.0  ;;  %v941_v33 = vmax.f32 %v937_v47, 0.0  ;;  %v944_v58 = vmax.f32 %v940_v35, 0.0  ;;  %v1713_v40 = vpack.c.bf16 %v1048_v37, %v1046_v32  ;;  %v1052_v46 = vld [vmem:[%s2981_s5 + $0x358] sm:$0xff]  ;;  %v1241_v15 = vld [vmem:[%s2983_s7 + $0x60] sm:$0xff]  ;;  %v1259_v18 = vld [vmem:[%s2983_s7 + $0xf0] sm:$0xff] }
 0x23f   : > { %v1715_v47 = vpack.c.bf16 %v1047_v20, %v1045_v41  ;;  %v1717_v35 = vpack.c.bf16 %v1052_v46, %v1050_v42  ;;  %v943_v14 = vmax.f32 %v2667_v51, 0.0  ;;  %v1260_v19 = vld [vmem:[%s2983_s7 + $0xf8] sm:$0xff]  ;;  %v1243_v2 = vld [vmem:[%s2983_s7 + $0x70] sm:$0xff]  ;;  %v1073_v13 = vld [vmem:[%s2982_s6] sm:$0x3] }
 0x240   : > { %1149 = vmatprep.mubr.f32.mxu0 %v942_v52  ;;  %v1054_v52 = vld [vmem:[%s2981_s5 + $0x368] sm:$0xff]  ;;  %v1769_v51 = vpack.c.bf16 %v1260_v19, %v1259_v18  ;;  %v1244_v21 = vld [vmem:[%s2983_s7 + $0x78] sm:$0xff]  ;;  %v1078_v24 = vrot.slane %v1073_v13, %v2230_v39  ;;  %v1082_v25 = vrot.slane %v1073_v13, %v2233_v43  ;;  %v1333_v29 = vld [vmem:[%s2985_s9] sm:$0xff] }
 0x241   : > { %1150 = vmatmul.mubr.f32.vlgmr.msra.gmra.mrb[0].mxu0 %v941_v33  ;;  %v1056_v33 = vld [vmem:[%s2981_s5 + $0x378] sm:$0xff]  ;;  %v1334_v30 = vld [vmem:[%s2985_s9 + $0x8] sm:$0xff]  ;;  %v1335_v39 = vld [vmem:[%s2985_s9 + $0x10] sm:$0xff] }
 0x242   : > { %1680 = vmatpush1.bf16.msra.mxu0 %v1679_v53  ;;  %1220 = vmatprep.mubr.f32.mxu0 %v944_v58  ;;  %v1719_v53 = vpack.c.bf16 %v1051_v50, %v1049_v44  ;;  %v1058_v58 = vld [vmem:[%s2981_s5 + $0x388] sm:$0xff]  ;;  %v1336_v43 = vld [vmem:[%s2985_s9 + $0x18] sm:$0xff]  ;;  %v1337_v20 = vld [vmem:[%s2985_s9 + $0x20] sm:$0xff] }
 0x243   : > { %1682 = vmatprep.subr.bf16.mxu0 %v1681_v55  ;;  %v1721_v55 = vpack.c.bf16 %v1056_v33, %v1054_v52  ;;  %v1777_v41 = vpack.c.bf16 %v1336_v43, %v1335_v39  ;;  %v1338_v42 = vld [vmem:[%s2985_s9 + $0x28] sm:$0xff]  ;;  %v1341_v50 = vld [vmem:[%s2985_s9 + $0x40] sm:$0xff] }
 0x244   : > { %v1780_v46 = vpack.c.bf16 %v1338_v42, %v1337_v20  ;;  %v1342_v52 = vld [vmem:[%s2985_s9 + $0x48] sm:$0xff]  ;;  %v1345_v57 = vld [vmem:[%s2985_s9 + $0x60] sm:$0xff] }
 0x245   : > { %v1786_v33 = vpack.c.bf16 %v1342_v52, %v1341_v50 }
 0x246   : > { %1684 = vmatpush1.bf16.msra.mxu0 %v1683_v59  ;;  %v1725_v59 = vpack.c.bf16 %v1060_v45, %v1058_v58  ;;  %v1346_v58 = vld [vmem:[%s2985_s9 + $0x68] sm:$0xff] }
 0x247   : > { %1686 = vmatprep.subr.bf16.mxu0 %v1685_v60  ;;  %v1057_v60 = vld [vmem:[%s2981_s5 + $0x380] sm:$0xff]  ;;  %v1792_v45 = vpack.c.bf16 %v1346_v58, %v1345_v57 }
 0x248   : > { %v1727_v48 = vpack.c.bf16 %v1059_v31, %v1057_v60  ;;  %v2024_v31 = vmov 0.0  }
 0x24a   : > { %1688 = vmatpush1.bf16.msra.mxu0 %v1687_v62  ;;  %v1729_v62 = vpack.c.bf16 %v1064_v36, %v1062_v61  ;;  %v1261_v36 = vld [vmem:[%s2984_s8] sm:$0x1] }
 0x24b   : > { %1690 = vmatprep.subr.bf16.mxu0 %v1689_v63  ;;  %v1061_v63 = vld [vmem:[%s2981_s5 + $0x3a0] sm:$0xff] }
 0x24c   : > { %v1731_v4 = vpack.c.bf16 %v1063_v0, %v1061_v63 }
 0x24e   : > { %1692 = vmatpush1.bf16.msra.mxu0 %v1691_v5  ;;  %v1733_v5 = vpack.c.bf16 %v1068_v3, %v1066_v1  ;;  %v1349_v1 = vld [vmem:[%s2986_s10] sm:$0x1] }
 0x24f   : > { %1694 = vmatprep.subr.bf16.mxu0 %v1693_v34  ;;  %v1065_v34 = vld [vmem:[%s2981_s5 + $0x3c0] sm:$0xff] }
 0x250   : > { %v1735_v8 = vpack.c.bf16 %v1067_v49, %v1065_v34 }
 0x252   : > { %1696 = vmatpush1.bf16.msra.mxu0 %v1695_v9  ;;  %v1737_v9 = vpack.c.bf16 %v1072_v7, %v1070_v6 }
 0x253   : > { %1698 = vmatprep.subr.bf16.mxu0 %v1697_v10  ;;  %v1069_v10 = vld [vmem:[%s2981_s5 + $0x3e0] sm:$0xff] }
 0x254   : > { %v1739_v12 = vpack.c.bf16 %v1071_v11, %v1069_v10 }
 0x256   : > { %1700 = vmatpush1.bf16.msra.mxu0 %v1699_v16  ;;  %v1242_v16 = vld [vmem:[%s2983_s7 + $0x68] sm:$0xff] }
 0x257   : > { %1702 = vmatprep.subr.bf16.mxu0 %v1701_v17  ;;  %v1767_v17 = vpack.c.bf16 %v1242_v16, %v1241_v15 }
 0x259   : > { %1768 = vmatpush3.bf16.msra.mxu1 %v1767_v17 }
 0x25a   : > { %1704 = vmatpush1.bf16.msra.mxu0 %v1703_v22  ;;  %v1771_v22 = vpack.c.bf16 %v1244_v21, %v1243_v2  ;;  %1770 = vmatprep.subr.bf16.mxu1 %v1769_v51 }
 0x25b   : > { %1706 = vmatprep.subr.bf16.mxu0 %v1705_v23  ;;  %v2022_v23 = vmov 0.0|0.0  }
 0x25d   : > { %1772 = vmatpush3.bf16.msra.mxu1 %v1771_v22 }
 0x25e   : > { %1708 = vmatpush1.bf16.msra.mxu0 %v1707_v28  ;;  %1773 = vmatprep.subr.bf16.mxu1 %v2022_v23 }
 0x25f   : > { %1710 = vmatprep.subr.bf16.mxu0 %v1709_v26 }
 0x262   : > { %1712 = vmatpush1.bf16.msra.mxu0 %v1711_v38  ;;  %v1774_v38 = vpack.c.bf16 %v1334_v30, %v1333_v29 }
 0x263   : > { %1714 = vmatprep.subr.bf16.mxu0 %v1713_v40 }
 0x266   : > { %1716 = vmatpush1.bf16.msra.mxu0 %v1715_v47  ;;  %v1339_v47 = vld [vmem:[%s2985_s9 + $0x30] sm:$0xff] }
 0x267   : > { %1718 = vmatprep.subr.bf16.mxu0 %v1717_v35  ;;  %v1340_v35 = vld [vmem:[%s2985_s9 + $0x38] sm:$0xff] }
 0x268   : > { %v1783_v44 = vpack.c.bf16 %v1340_v35, %v1339_v47 }
 0x26a   : > { %1720 = vmatpush1.bf16.msra.mxu0 %v1719_v53  ;;  %v1343_v53 = vld [vmem:[%s2985_s9 + $0x50] sm:$0xff] }
 0x26b   : > { %1722 = vmatprep.subr.bf16.mxu0 %v1721_v55  ;;  %v1344_v55 = vld [vmem:[%s2985_s9 + $0x58] sm:$0xff] }
 0x26c   : > { %v1789_v56 = vpack.c.bf16 %v1344_v55, %v1343_v53 }
 0x26e   : > { %1724 = vmatpush1.bf16.msra.mxu0 %v1723_v54  ;;  %v1347_v54 = vld [vmem:[%s2985_s9 + $0x70] sm:$0xff] }
 0x26f   : > { %1726 = vmatprep.subr.bf16.mxu0 %v1725_v59  ;;  %v1348_v59 = vld [vmem:[%s2985_s9 + $0x78] sm:$0xff] }
 0x270   : > { %v1795_v60 = vpack.c.bf16 %v1348_v59, %v1347_v54 }
 0x272   : > { %1728 = vmatpush1.bf16.msra.mxu0 %v1727_v48 }
 0x273   : > { %1730 = vmatprep.subr.bf16.mxu0 %v1729_v62 }
 0x276   : > { %1732 = vmatpush1.bf16.msra.mxu0 %v1731_v4 }
 0x277   : > { %1734 = vmatprep.subr.bf16.mxu0 %v1733_v5 }
 0x27a   : > { %1736 = vmatpush1.bf16.msra.mxu0 %v1735_v8 }
 0x27b   : > { %1738 = vmatprep.subr.bf16.mxu0 %v1737_v9 }
 0x27e   : > { %1740 = vmatpush1.bf16.msra.mxu0 %v1739_v12 }
 0x281   : > { %1221 = vmatmul.mubr.f32.vlgmr.msra.gmra.mrb[0].mxu0 %v943_v14 }
 0x354   : > { %v1222_v27 = vpop.f32.mrb[0].mxu0 }
 0x355   : > { %v1797_v28 = vadd.f32 %v1222_v27, %v1078_v24  ;;  %v1224_v26 = vpop.f32.mrb[1].mxu0 }
 0x356   : > { %v1798_v32 = vadd.f32 %v1224_v26, %v1082_v25 }
 0x357   : > { %v1227_v40 = vmax.f32 %v1797_v28, 0.0 }
 0x358   : > { %v1228_v37 = vmax.f32 %v1798_v32, 0.0 }
 0x35a   : > { %1326 = vmatprep.mubr.f32.mxu1 %v1228_v37 }
 0x35b   : > { %1327 = vmatmul.mubr.f32.vlgmr.msra.gmra.mrb[0].mxu1 %v1227_v40 }
 0x35c   : > { %1775 = vmatpush3.bf16.msra.mxu1 %v1774_v38  ;;  %1610 = vmatprep.mubr.msk.f32.mxu1 %vm2023_vm2, %v2024_v31 }
 0x35d   : > { %1776 = vmatprep.subr.bf16.mxu1 %v2022_v23 }
 0x360   : > { %1778 = vmatpush3.bf16.msra.mxu1 %v1777_v41 }
 0x361   : > { %1779 = vmatprep.subr.bf16.mxu1 %v2022_v23 }
 0x364   : > { %1781 = vmatpush3.bf16.msra.mxu1 %v1780_v46 }
 0x365   : > { %1782 = vmatprep.subr.bf16.mxu1 %v2022_v23 }
 0x368   : > { %1784 = vmatpush3.bf16.msra.mxu1 %v1783_v44 }
 0x369   : > { %1785 = vmatprep.subr.bf16.mxu1 %v2022_v23 }
 0x36c   : > { %1787 = vmatpush3.bf16.msra.mxu1 %v1786_v33 }
 0x36d   : > { %1788 = vmatprep.subr.bf16.mxu1 %v2022_v23 }
 0x370   : > { %1790 = vmatpush3.bf16.msra.mxu1 %v1789_v56 }
 0x371   : > { %1791 = vmatprep.subr.bf16.mxu1 %v2022_v23 }
 0x374   : > { %1793 = vmatpush3.bf16.msra.mxu1 %v1792_v45 }
 0x375   : > { %1794 = vmatprep.subr.bf16.mxu1 %v2022_v23 }
 0x378   : > { %1796 = vmatpush3.bf16.msra.mxu1 %v1795_v60 }
 0x42e   : > { %v1558_v61 = vpop.f32.mrb[0].mxu1 }
 0x42f   : > { %v1559_v48 = vpop.f32.mrb[1].mxu1 }
 0x430   : > { %v1560_v62 = vadd.f32 %v1559_v48, %v1558_v61 }
 0x432   : > { %v1329_v63 = vadd.f32 %v1560_v62, %v1261_v36 }
 0x434   : > { %v1332_v0 = vmax.f32 %v1329_v63, 0.0 }
 0x436   : > { %1611 = vmatmul.mubr.f32.vlgmr.msra.gmra.mrb[2].mxu1 %v1332_v0 }
 0x509   : > { %v1416_v3 = vpop.f32.mrb[2].mxu1 }
 0x50a   : > { %v1417_v4 = vadd.f32 %v1416_v3, %v1349_v1  ;;  %v1612_v5 = vpop.f32.mrb[3].mxu1 }
 0x50c   : > { %1420 = vst [vmem:[%s2167_s13] sm:$0x1] %v1417_v4 }
 0x50d PF: > { %s1523_s16 = sshll.u32 %s2003_s21, 4  ;;  %s1434_s12 = sshll.u32 %s2167_s13, 4  ;;  %s1435_s12 = int_to_ptr.vmem [resolvable:$true] %s1434_s12 }
 0x50e   : > { %s2926_s0 = scalar_lea.hbm %s2987_s11, %s1523_s16  ;;  %s3002_s20 = sand.u32 1, %s1991_s18  }
 0x50f   : > { %s1422_s26 = scalar_lea.sflag [#allocation4], %s3002_s20  ;;  %s1921_s23 = scalar_lea.vmem %s1435_s12, 16 }
 0x510   : > { %p1922_p2 = scmp.ne.s32.totalorder %s1435_s12, %s1921_s23  ;;  %s2025_s22 = smov [#allocation3]  }
 0x511   : > { %s1925_s27 = sshll.u32 %s2025_s22, 4  ;;  %s1926_s27 = int_to_ptr.vmem [resolvable:$false] %s1925_s27 }
 0x512   : > { %p1923_p4 = pnand %p1922_p2, %p2135_p3  ;;  %s1927_s1 = scalar_lea.vmem %s1926_s27, 32 }
 0x513   : > { %p1928_p6 = scmp.lt.s32.totalorder %s1435_s12, %s1926_s27  ;;  %p1929_p7 = scmp.lt.s32.totalorder %s1927_s1, %s1921_s23 }
 0x514   : > { %p1924_p5 = pneg %p1923_p4 }
 0x515   : > { %p1930_p8 = por %p1929_p7, %p1928_p6 }
 0x517   : > { %p1931_p10 = pnand %p1930_p8, %p1924_p5 }
 0x519   : > { %1934 = shalt.err (!%p1931_p10)
}
 0x51a   : > { %s1935_s21 = scalar_lea.hbm %s2926_s0, 16  ;;  %s1939_s16 = scalar_lea.hbm %s2987_s11, 32 }
 0x51b   : > { %p1936_p11 = scmp.ne.s32.totalorder %s2926_s0, %s1935_s21  ;;  %p1940_p0 = scmp.lt.u32.totalorder %s2926_s0, %s2987_s11 }
 0x51c   : > { %p1941_p1 = scmp.lt.u32.totalorder %s1939_s16, %s1935_s21  ;;  %p1943_p4 = scmp.lt.u32.totalorder %s1935_s21, %s2926_s0 }
 0x51d   : > { %p1937_p12 = pnand %p1936_p11, %p2135_p3 }
 0x51e   : > { %p1942_p2 = por %p1941_p1, %p1940_p0 }
 0x51f   : > { %p1938_p13 = pneg %p1937_p12 }
 0x520   : > { %p1944_p5 = por %p1943_p4, %p1942_p2 }
 0x522   : > { %p1945_p6 = pnand %p1944_p5, %p1938_p13 }
 0x524   : > { %1948 = shalt.err (!%p1945_p6)
}
 0x525   : > { %1801 = dma.vmem_to_hbm [thread:$0]  (%p2135_p3), %s1435_s12, 16, %s2926_s0, %s1422_s26  }
 0x526 PF: > { %p1807_p7 = scmp.ge.s32.totalorder %s2015_s24, 2  ;;  %s1446_s20 = sand.u32 1, %s1987_s17  }
 0x527   : > { %s1447_s23 = scalar_lea.sflag [#allocation4], %s1446_s20 }
 0x528   : > { %p1804_p8 = pnand %p1807_p7, %p2145_p9 }
 0x52a   : > { %1982 = dma.done.wait (!%p1804_p8), %s1447_s23, 16  }
 0x52b   : > { %1984 = vsyncadd (!%p1804_p8), %s1447_s23, 4294967280  ;;  %s24_s24 = sadd.s32 1, %s2015_s24   ;;  %s3003_s20 = sld [smem:[#allocation6_spill]] }
 0x52c   : > { %p21_p10 = scmp.ge.s32.totalorder %s24_s24, 6   ;;  %s3004_s21 = sld [smem:[#allocation7_spill]] }
 0x52d   : > { %s3005_s22 = sld [smem:[#allocation8_spill]]  ;;  %s3006_s23 = sld [smem:[#allocation9_spill]] }
 0x52e   : > { %s3007_s17 = smov %s1991_s18  ;;  %s3008_s18 = smov %s1995_s19 }
 0x52f   : > { %s3009_s19 = smov %s2153_s14  ;;  %23 = sbr.rel (!%p21_p10) target bundleno = 8 (0x8), region = 107 }
 0x536   :  { %1451 = vsyncpa [#allocation4], 1 }
 0x537   :  { %1453 = vsyncpa [#allocation4 + $0x1], 1 }

</bundles_post_ra>
